<compile_context>
chip_gen: v5e
topology: v5e:2x2
jax: 0.10.0
libtpu: 0.0.40
codegen_flags: <defaults>
</compile_context>

<pallas_src>
import functools

import jax
import jax.numpy as jnp
from jax.experimental import pallas as pl
from jax.experimental.pallas import tpu as pltpu

_EPS = 1e-8


def _round_up(v, n):
    return ((v + n - 1) // n) * n


def _vmem_budget():
    """Generation-aware sizing: ~40% of VMEM for resident blocks/temps, capped."""
    try:
        cap = int(pltpu.get_tpu_info().vmem_capacity_bytes)
    except Exception:          # e.g. interpret mode / older runtimes
        cap = 64 << 20         # conservative (v7x per-core VMEM)
    budget = max(min(cap * 2 // 5, 48 << 20), 8 << 20)
    vmem_limit = max(min(cap - (16 << 20), budget + (24 << 20)), 32 << 20)
    return budget, vmem_limit


def _choose_pack_factor(m, d_b, d_x):
    """Common row-packing factor k (k | m): pack k rows into one lane-dense row.

    Used only when both feature dims are narrow (< 128); the per-row reductions
    then go to the MXU via a block-diagonal ones matrix.  k == 1 -> plain path.
    """
    if max(d_b, d_x) >= 128 or m < 8:
        return 1
    kmax = max(1, 128 // min(d_b, d_x))
    kmax = min(kmax, m // 8, 128)          # keep >= 8 packed rows (sublane usage)
    while kmax > 1 and kmax * max(d_b, d_x) > 1024:
        kmax //= 2                         # bound the (k*D, k) reduction matrices
    for k in range(min(kmax, m), 0, -1):
        if m % k == 0:
            return k
    return 1


def _choose_tile_rows(mp, w_b, w_x, isz_b, isz_x, avail):
    """Largest packed-row tile (multiple of 8) fitting the VMEM allowance."""
    def per_row(w, isz):
        wpad = _round_up(w, 128)
        # 2 halves x 2 pipeline buffers of the input block, plus ~6 lane-padded
        # f32 rows of in-kernel temporaries (casts / elementwise products).
        return 2 * 2 * wpad * isz + 6 * wpad * 4

    total = per_row(w_b, isz_b) + per_row(w_x, isz_x)
    avail = max(avail, 1 << 20)
    t = max(8, (avail // total // 8) * 8)
    return mp if t >= mp else int(t)


def _reduction_matrix(d, k):
    """(k*d, k) block-diagonal ones: column j sums the j-th packed feature block."""
    rows = jnp.arange(k * d, dtype=jnp.int32) // d
    cols = jnp.arange(k, dtype=jnp.int32)
    return (rows[:, None] == cols[None, :]).astype(jnp.float32)


def _bihalf_kernel(b_ref, x_ref, *rest, k, mp, tmp):
    """One grid step: packed rows [i*tmp, (i+1)*tmp) of both halves of b and x."""
    if k > 1:
        eb_ref, ex_ref, out_ref = rest
    else:
        eb_ref = ex_ref = None
        (out_ref,) = rest

    i = pl.program_id(0)

    def _cosine(a_ref, e_ref):
        a1 = a_ref[0].astype(jnp.float32)            # (tmp, k*D)
        a2 = a_ref[1].astype(jnp.float32)
        if k > 1:
            # Lane-dense rows: per-original-row sums via MXU matmul against the
            # constant block-diagonal ones matrix (MXU is otherwise idle).
            mm = functools.partial(jnp.dot,
                                   precision=jax.lax.Precision.HIGHEST,
                                   preferred_element_type=jnp.float32)
            e = e_ref[...]                            # (k*D, k)
            dot = mm(a1 * a2, e)                      # (tmp, k)
            s1 = mm(a1 * a1, e)
            s2 = mm(a2 * a2, e)
        else:
            dot = jnp.sum(a1 * a2, axis=-1, keepdims=True)   # (tmp, 1)
            s1 = jnp.sum(a1 * a1, axis=-1, keepdims=True)
            s2 = jnp.sum(a2 * a2, axis=-1, keepdims=True)
        # torch.cosine_similarity clamps the norm *product*: dot / sqrt(max(s1*s2, eps^2))
        return dot * jax.lax.rsqrt(jnp.maximum(s1 * s2, _EPS * _EPS))

    diff = _cosine(b_ref, eb_ref) - _cosine(x_ref, ex_ref)   # per-original-row cos diffs

    def _write(sq_sum):
        out_ref[...] = jnp.broadcast_to(sq_sum, out_ref.shape)

    if mp % tmp == 0:
        # Every tile is full: no mask work anywhere.
        _write(jnp.sum(diff * diff))
    else:
        last = pl.num_programs(0) - 1

        @pl.when(i != last)
        def _full_tile():
            _write(jnp.sum(diff * diff))

        @pl.when(i == last)
        def _tail_tile():
            # Only the single partial tail tile pays for the iota/compare/select.
            rows = jax.lax.broadcasted_iota(jnp.int32, diff.shape, 0) + i * tmp
            _write(jnp.sum(jnp.where(rows < mp, diff * diff, 0.0)))


def bihalf_loss(x, h, b, labels, index=None, *, tile_rows=None):
    """Pallas implementation of BiHalfLoss.forward.  h / index are unused."""
    del h, index
    n = x.shape[0]
    if n % 2 != 0:
        labels = labels[:-1]
        b = b[:-1]
        x = x[:-1]
        n -= 1
    m = n // 2
    if m == 0:
        # torch mse_loss over zero elements yields NaN
        return jnp.float32(jnp.nan)

    d_b, d_x = b.shape[1], x.shape[1]
    isz_b = jnp.dtype(b.dtype).itemsize
    isz_x = jnp.dtype(x.dtype).itemsize

    k = _choose_pack_factor(m, d_b, d_x)
    mp, w_b, w_x = m // k, k * d_b, k * d_x

    # Contiguous (free) reshapes: each grid step sees both halves of both arrays
    # in a single block -> exactly one HBM pass per array.
    b3 = b.reshape(2, mp, w_b)
    x3 = x.reshape(2, mp, w_x)

    inputs = [b3, x3]
    extra_vmem = 4 * 8 * 128 * 4                     # double-buffered output blocks (tiny)
    if k > 1:
        inputs += [_reduction_matrix(d_b, k), _reduction_matrix(d_x, k)]
        extra_vmem += (_round_up(w_b, 8) + _round_up(w_x, 8)) * 128 * 4 * 2

    budget, vmem_limit = _vmem_budget()
    if tile_rows is None:
        tmp = _choose_tile_rows(mp, w_b, w_x, isz_b, isz_x, budget - extra_vmem)
    else:
        tmp = min(int(tile_rows), mp)
        if tmp < mp and tmp % 8 != 0:
            raise ValueError("tile_rows must be a multiple of 8 or cover all rows")

    grid_n = pl.cdiv(mp, tmp)

    in_specs = [
        pl.BlockSpec((2, tmp, w_b), lambda i: (0, i, 0)),
        pl.BlockSpec((2, tmp, w_x), lambda i: (0, i, 0)),
    ]
    if k > 1:
        # Constant blocks: same block index every step -> fetched once, stay resident.
        in_specs += [
            pl.BlockSpec((w_b, k), lambda i: (0, 0)),
            pl.BlockSpec((w_x, k), lambda i: (0, 0)),
        ]

    cost = pl.CostEstimate(
        flops=int(m * (6 * (d_b + d_x) + 12)),
        transcendentals=int(2 * m),
        bytes_accessed=int(2 * m * (d_b * isz_b + d_x * isz_x)
                           + grid_n * 8 * 128 * 4
                           + ((w_b + w_x) * k * 4 if k > 1 else 0)),
    )

    partials = pl.pallas_call(
        functools.partial(_bihalf_kernel, k=k, mp=mp, tmp=tmp),
        out_shape=jax.ShapeDtypeStruct((grid_n, 8, 128), jnp.float32),
        grid=(grid_n,),
        in_specs=in_specs,
        out_specs=pl.BlockSpec((1, 8, 128), lambda i: (i, 0, 0)),
        compiler_params=pltpu.CompilerParams(
            dimension_semantics=("parallel",),       # independent tiles; v7x uses both TCs
            vmem_limit_bytes=int(vmem_limit),
        ),
        cost_estimate=cost,
    )(*inputs)

    return jnp.sum(partials[:, 0, 0]) / jnp.float32(m)


def _bihalf_loss_ref(x, b):
    """Plain-JAX reference (mirrors torch's cosine_similarity norm-product clamp)."""
    n = x.shape[0] - (x.shape[0] % 2)
    x = x[:n].astype(jnp.float32)
    b = b[:n].astype(jnp.float32)
    m = n // 2

    def cos(a, c):
        dot = jnp.sum(a * c, axis=1)
        s1 = jnp.sum(a * a, axis=1)
        s2 = jnp.sum(c * c, axis=1)
        return dot / jnp.sqrt(jnp.maximum(s1 * s2, _EPS * _EPS))

    tb = cos(b[:m], b[m:])
    tx = cos(x[:m], x[m:])
    return jnp.mean((tb - tx) ** 2)


if __name__ == "__main__":
    key = jax.random.PRNGKey(0)

    def check(batch, feat_x, feat_h, tile_rows=None):
        kx, kh, kb, kl = jax.random.split(jax.random.fold_in(key, batch * 1000 + feat_x), 4)
        x = jax.random.normal(kx, (batch, feat_x), dtype=jnp.float32)            # features before hash layer
        h = jax.random.normal(kh, (batch, feat_h), dtype=jnp.float32)            # hash FC output (unused)
        b = jnp.sign(jax.random.normal(kb, (batch, feat_h), dtype=jnp.float32))  # binary codes
        labels = jax.random.randint(kl, (batch,), 0, 10)                         # only used for trimming
        index = jnp.arange(batch)
        loss = jax.block_until_ready(bihalf_loss(x, h, b, labels, index, tile_rows=tile_rows))
        ref = _bihalf_loss_ref(x, b)
        assert jnp.allclose(loss, ref, atol=1e-5, rtol=1e-4), (batch, feat_x, feat_h, loss, ref)

    # Lane-packed path (both dims < 128): k=8, single full tile, no masking.
    check(batch=128, feat_x=32, feat_h=16)
    # Unpacked path (wide x), odd batch trim, multi-tile grid with masked partial tail.
    check(batch=53, feat_x=256, feat_h=16, tile_rows=8)
    # Lane-packed path with multi-tile grid and masked partial tail (m=136, k=8, mp=17).
    check(batch=272, feat_x=16, feat_h=16, tile_rows=8)

    print("KERNEL_OK")
</pallas_src>

<mosaic_0001>
module attributes {stable_mosaic.version = 11 : i64} {
  func.func @_bihalf_kernel(%arg0: i32, %arg1: memref<2x8x128xf32, #tpu.memory_space<vmem>>, %arg2: memref<2x8x256xf32, #tpu.memory_space<vmem>>, %arg3: memref<128x8xf32, #tpu.memory_space<vmem>>, %arg4: memref<256x8xf32, #tpu.memory_space<vmem>>, %arg5: memref<1x8x128xf32, #tpu.memory_space<vmem>>) attributes {dimension_semantics = [#tpu.dimension_semantics<parallel>], iteration_bounds = array<i64: 1>, scalar_prefetch = 0 : i64, scratch_operands = 0 : i64, tpu.core_type = #tpu.core_type<tc>, window_params = [{transform_indices = @transform_0, window_bounds = array<i64: 2, 8, 128>}, {transform_indices = @transform_1, window_bounds = array<i64: 2, 8, 256>}, {pipeline_mode = #tpu.pipeline_mode<synchronous>, transform_indices = @transform_2, window_bounds = array<i64: 128, 8>}, {pipeline_mode = #tpu.pipeline_mode<synchronous>, transform_indices = @transform_3, window_bounds = array<i64: 256, 8>}, {transform_indices = @transform_4, window_bounds = array<i64: 1, 8, 128>}]} {
    %c0 = arith.constant 0 : index
    %c0_0 = arith.constant 0 : index
    %c0_1 = arith.constant 0 : index
    %0 = vector.load %arg1[%c0, %c0_0, %c0_1] : memref<2x8x128xf32, #tpu.memory_space<vmem>>, vector<1x8x128xf32>
    %1 = vector.shape_cast %0 : vector<1x8x128xf32> to vector<8x128xf32>
    %c1 = arith.constant 1 : index
    %c0_2 = arith.constant 0 : index
    %c0_3 = arith.constant 0 : index
    %2 = vector.load %arg1[%c1, %c0_2, %c0_3] : memref<2x8x128xf32, #tpu.memory_space<vmem>>, vector<1x8x128xf32>
    %3 = vector.shape_cast %2 : vector<1x8x128xf32> to vector<8x128xf32>
    %c0_4 = arith.constant 0 : index
    %c0_5 = arith.constant 0 : index
    %4 = vector.load %arg3[%c0_4, %c0_5] : memref<128x8xf32, #tpu.memory_space<vmem>>, vector<128x8xf32>
    %5 = arith.mulf %1, %3 : vector<8x128xf32>
    %cst = arith.constant dense<0.000000e+00> : vector<8x8xf32>
    %6 = tpu.matmul %5, %4, %cst {dimension_numbers = #tpu.dot_dimension_numbers<[1], [0], [0], [1], [0, 0, 1, 1], [], []>, precision = #tpu.contract_precision<fp32>} : vector<8x128xf32>, vector<128x8xf32>, vector<8x8xf32> -> vector<8x8xf32>
    %7 = arith.mulf %1, %1 : vector<8x128xf32>
    %cst_6 = arith.constant dense<0.000000e+00> : vector<8x8xf32>
    %8 = tpu.matmul %7, %4, %cst_6 {dimension_numbers = #tpu.dot_dimension_numbers<[1], [0], [0], [1], [0, 0, 1, 1], [], []>, precision = #tpu.contract_precision<fp32>} : vector<8x128xf32>, vector<128x8xf32>, vector<8x8xf32> -> vector<8x8xf32>
    %9 = arith.mulf %3, %3 : vector<8x128xf32>
    %cst_7 = arith.constant dense<0.000000e+00> : vector<8x8xf32>
    %10 = tpu.matmul %9, %4, %cst_7 {dimension_numbers = #tpu.dot_dimension_numbers<[1], [0], [0], [1], [0, 0, 1, 1], [], []>, precision = #tpu.contract_precision<fp32>} : vector<8x128xf32>, vector<128x8xf32>, vector<8x8xf32> -> vector<8x8xf32>
    %11 = arith.mulf %8, %10 : vector<8x8xf32>
    %cst_8 = arith.constant 1.000000e-16 : f32
    %12 = vector.broadcast %cst_8 : f32 to vector<8x8xf32>
    %13 = arith.maximumf %11, %12 : vector<8x8xf32>
    %14 = math.rsqrt %13 : vector<8x8xf32>
    %15 = arith.mulf %6, %14 : vector<8x8xf32>
    %c0_9 = arith.constant 0 : index
    %c0_10 = arith.constant 0 : index
    %c0_11 = arith.constant 0 : index
    %16 = vector.load %arg2[%c0_9, %c0_10, %c0_11] : memref<2x8x256xf32, #tpu.memory_space<vmem>>, vector<1x8x256xf32>
    %17 = vector.shape_cast %16 : vector<1x8x256xf32> to vector<8x256xf32>
    %c1_12 = arith.constant 1 : index
    %c0_13 = arith.constant 0 : index
    %c0_14 = arith.constant 0 : index
    %18 = vector.load %arg2[%c1_12, %c0_13, %c0_14] : memref<2x8x256xf32, #tpu.memory_space<vmem>>, vector<1x8x256xf32>
    %19 = vector.shape_cast %18 : vector<1x8x256xf32> to vector<8x256xf32>
    %c0_15 = arith.constant 0 : index
    %c0_16 = arith.constant 0 : index
    %20 = vector.load %arg4[%c0_15, %c0_16] : memref<256x8xf32, #tpu.memory_space<vmem>>, vector<256x8xf32>
    %21 = arith.mulf %17, %19 : vector<8x256xf32>
    %cst_17 = arith.constant dense<0.000000e+00> : vector<8x8xf32>
    %22 = tpu.matmul %21, %20, %cst_17 {dimension_numbers = #tpu.dot_dimension_numbers<[1], [0], [0], [1], [0, 0, 1, 1], [], []>, precision = #tpu.contract_precision<fp32>} : vector<8x256xf32>, vector<256x8xf32>, vector<8x8xf32> -> vector<8x8xf32>
    %23 = arith.mulf %17, %17 : vector<8x256xf32>
    %cst_18 = arith.constant dense<0.000000e+00> : vector<8x8xf32>
    %24 = tpu.matmul %23, %20, %cst_18 {dimension_numbers = #tpu.dot_dimension_numbers<[1], [0], [0], [1], [0, 0, 1, 1], [], []>, precision = #tpu.contract_precision<fp32>} : vector<8x256xf32>, vector<256x8xf32>, vector<8x8xf32> -> vector<8x8xf32>
    %25 = arith.mulf %19, %19 : vector<8x256xf32>
    %cst_19 = arith.constant dense<0.000000e+00> : vector<8x8xf32>
    %26 = tpu.matmul %25, %20, %cst_19 {dimension_numbers = #tpu.dot_dimension_numbers<[1], [0], [0], [1], [0, 0, 1, 1], [], []>, precision = #tpu.contract_precision<fp32>} : vector<8x256xf32>, vector<256x8xf32>, vector<8x8xf32> -> vector<8x8xf32>
    %27 = arith.mulf %24, %26 : vector<8x8xf32>
    %cst_20 = arith.constant 1.000000e-16 : f32
    %28 = vector.broadcast %cst_20 : f32 to vector<8x8xf32>
    %29 = arith.maximumf %27, %28 : vector<8x8xf32>
    %30 = math.rsqrt %29 : vector<8x8xf32>
    %31 = arith.mulf %22, %30 : vector<8x8xf32>
    %32 = arith.subf %15, %31 : vector<8x8xf32>
    %33 = arith.mulf %32, %32 : vector<8x8xf32>
    %34 = vector.shape_cast %33 : vector<8x8xf32> to vector<1x8x8xf32>
    %cst_21 = arith.constant dense<0.000000e+00> : vector<1xf32>
    %35 = vector.multi_reduction <add>, %34, %cst_21 [1, 2] : vector<1x8x8xf32> to vector<1xf32>
    %36 = vector.shape_cast %35 : vector<1xf32> to vector<1x1x1xf32>
    %37 = vector.extract %36[0, 0, 0] : f32 from vector<1x1x1xf32>
    %38 = vector.broadcast %37 : f32 to vector<1x8x128xf32>
    %c0_22 = arith.constant 0 : index
    %c0_23 = arith.constant 0 : index
    %c0_24 = arith.constant 0 : index
    %39 = vector.load %arg5[%c0_22, %c0_23, %c0_24] : memref<1x8x128xf32, #tpu.memory_space<vmem>>, vector<1x8x128xf32>
    tpu.vector_store %arg5[%c0_22, %c0_23, %c0_24], %38 {strides = array<i32>} : memref<1x8x128xf32, #tpu.memory_space<vmem>>, vector<1x8x128xf32>,
    return
  }
  func.func @transform_0(%arg0: i32) -> (i32, i32, i32) {
    %c0_i32 = arith.constant 0 : i32
    %c0_i32_0 = arith.constant 0 : i32
    %c0_i32_1 = arith.constant 0 : i32
    return %c0_i32, %arg0, %c0_i32_0 : i32, i32, i32
  }
  func.func @transform_1(%arg0: i32) -> (i32, i32, i32) {
    %c0_i32 = arith.constant 0 : i32
    %c0_i32_0 = arith.constant 0 : i32
    %c0_i32_1 = arith.constant 0 : i32
    return %c0_i32, %arg0, %c0_i32_0 : i32, i32, i32
  }
  func.func @transform_2(%arg0: i32) -> (i32, i32) {
    %c0_i32 = arith.constant 0 : i32
    %c0_i32_0 = arith.constant 0 : i32
    %c0_i32_1 = arith.constant 0 : i32
    return %c0_i32, %c0_i32_0 : i32, i32
  }
  func.func @transform_3(%arg0: i32) -> (i32, i32) {
    %c0_i32 = arith.constant 0 : i32
    %c0_i32_0 = arith.constant 0 : i32
    %c0_i32_1 = arith.constant 0 : i32
    return %c0_i32, %c0_i32_0 : i32, i32
  }
  func.func @transform_4(%arg0: i32) -> (i32, i32, i32) {
    %c0_i32 = arith.constant 0 : i32
    %c0_i32_0 = arith.constant 0 : i32
    %c0_i32_1 = arith.constant 0 : i32
    return %arg0, %c0_i32, %c0_i32_0 : i32, i32, i32
  }
}

</mosaic_0001>

<bundles_post_ra>
// kernel: tpu_custom_call.1
= control target key start
LH: loop header
LB: loop body
LE: loop exit
PB: predicated region body
PF: predicated region fallthrough
CT: control target
= control target key end

     0   :  { %s5011_s0 = inlined_call_operand.vmem [shape: f32[2,8,128], index: 0, kind: input, shape index: {}]   ;;  %s5012_s1 = inlined_call_operand.vmem [shape: f32[2,8,256], index: 1, kind: input, shape index: {}]   ;;  %s5013_s2 = inlined_call_operand.vmem [shape: f32[128,8], index: 2, kind: input, shape index: {}]   ;;  %s5014_s3 = inlined_call_operand.vmem [shape: f32[256,8], index: 3, kind: input, shape index: {}]   ;;  %s5015_s4 = inlined_call_operand.hbm [shape: f32[1,8,128], index: 4, kind: output, shape index: {}]  }
   0x1   :  { %v36_v0 = vld [vmem:[%s5013_s2 + $0x78] sm:$0xff]  ;;  %v35_v1 = vld [vmem:[%s5013_s2 + $0x70] sm:$0xff]  ;;  %v34_v2 = vld [vmem:[%s5013_s2 + $0x68] sm:$0xff] }
   0x2   :  { %v3282_v3 = vand.u32 4294901760, %v36_v0  ;;  %v3284_v4 = vand.u32 4294901760, %v35_v1  ;;  %v3286_v5 = vand.u32 4294901760, %v34_v2  ;;  %v33_v6 = vld [vmem:[%s5013_s2 + $0x60] sm:$0xff]  ;;  %v32_v7 = vld [vmem:[%s5013_s2 + $0x58] sm:$0xff]  ;;  %v31_v8 = vld [vmem:[%s5013_s2 + $0x50] sm:$0xff] }
   0x3   :  { %v3297_v9 = vand.u32 4294901760, %v33_v6  ;;  %v3299_v10 = vand.u32 4294901760, %v32_v7  ;;  %v3301_v11 = vand.u32 4294901760, %v31_v8  ;;  %v30_v12 = vld [vmem:[%s5013_s2 + $0x48] sm:$0xff]  ;;  %v29_v13 = vld [vmem:[%s5013_s2 + $0x40] sm:$0xff]  ;;  %v28_v19 = vld [vmem:[%s5013_s2 + $0x38] sm:$0xff] }
   0x4   :  { %39 = vmatpush.msra.mxu0 %v3282_v3  ;;  %v3311_v14 = vsub.f32 %v36_v0, %v3282_v3  ;;  %v3314_v15 = vsub.f32 %v35_v1, %v3284_v4  ;;  %v3317_v16 = vsub.f32 %v34_v2, %v3286_v5  ;;  %235 = vmatpush.msra.mxu3 %v3282_v3  ;;  %v3320_v17 = vand.u32 4294901760, %v30_v12  ;;  %v27_v25 = vld [vmem:[%s5013_s2 + $0x30] sm:$0xff] }
   0x5   :  { %v3323_v18 = vsub.f32 %v33_v6, %v3297_v9  ;;  %v3329_v20 = vsub.f32 %v32_v7, %v3299_v10  ;;  %v3342_v24 = vand.u32 4294901760, %v29_v13  ;;  %v3355_v28 = vsub.f32 %v31_v8, %v3301_v11 }
   0x6   :  { %41 = vmatpush.msra.mxu0 %v3284_v4  ;;  %v3333_v21 = vand.u32 4294901760, %v3311_v14  ;;  %v3336_v22 = vand.u32 4294901760, %v3314_v15  ;;  %182 = vmatpush.msra.mxu2 %v3311_v14  ;;  %v3340_v23 = vand.u32 4294901760, %v3317_v16 }
   0x7   :  { %v3348_v26 = vand.u32 4294901760, %v3323_v18  ;;  %237 = vmatpush.msra.mxu3 %v3284_v4  ;;  %v3352_v27 = vand.u32 4294901760, %v3329_v20 }
   0x9   :  { %5211 = vst [vmem:[#allocation5_spill] sm:$0xff] %v3352_v27 }
   0xa   :  { %9 = vsyncpa [#allocation3], 0  ;;  %43 = vmatpush.msra.mxu0 %v3286_v5  ;;  %v82_v29 = vsub.f32 %v3311_v14, %v3333_v21  ;;  %v88_v30 = vsub.f32 %v3314_v15, %v3336_v22  ;;  %v94_v31 = vsub.f32 %v3317_v16, %v3340_v23  ;;  %185 = vmatpush.msra.mxu2 %v3314_v15  ;;  %v3365_v32 = vand.u32 4294901760, %v28_v19  ;;  %v26_v35 = vld [vmem:[%s5013_s2 + $0x28] sm:$0xff]  ;;  %v25_v40 = vld [vmem:[%s5013_s2 + $0x20] sm:$0xff]  ;;  %s3200_s19 = sshll.u32 %s5015_s4, 4  ;;  %s3201_s19 = int_to_ptr.hbm [resolvable:$true] %s3200_s19 }
   0xb   :  { %v100_v33 = vsub.f32 %v3323_v18, %v3348_v26  ;;  %239 = vmatpush.msra.mxu3 %v3286_v5  ;;  %v3370_v34 = vand.u32 4294901760, %v27_v25  ;;  %v3376_v36 = vsub.f32 %v30_v12, %v3320_v17  ;;  %v3385_v39 = vand.u32 4294901760, %v3355_v28  ;;  %v24_v48 = vld [vmem:[%s5013_s2 + $0x18] sm:$0xff]  ;;  %v23_v52 = vld [vmem:[%s5013_s2 + $0x10] sm:$0xff]  ;;  %v22_v58 = vld [vmem:[%s5013_s2 + $0x8] sm:$0xff] }
   0xc   :  { %45 = vmatpush.msra.mxu0 %v3297_v9  ;;  %v3379_v37 = vand.u32 4294901760, %v82_v29  ;;  %v3381_v38 = vand.u32 4294901760, %v88_v30  ;;  %188 = vmatpush.msra.mxu2 %v3317_v16  ;;  %v3391_v41 = vsub.f32 %v29_v13, %v3342_v24  ;;  %v106_v42 = vsub.f32 %v3329_v20, %v3352_v27  ;;  %v21_v0 = vld [vmem:[%s5013_s2] sm:$0xff] }
   0xd   :  { %5212 = vst [vmem:[#allocation6_spill] sm:$0xff] %v3385_v39  ;;  %241 = vmatpush.msra.mxu3 %v3297_v9  ;;  %v3398_v43 = vand.u32 4294901760, %v94_v31  ;;  %v3400_v44 = vand.u32 4294901760, %v26_v35  ;;  %v3403_v45 = vand.u32 4294901760, %v3376_v36  ;;  %v3406_v46 = vsub.f32 %v28_v19, %v3365_v32 }
   0xe   :  { %47 = vmatpush.msra.mxu0 %v3299_v10  ;;  %84 = vmatpush.msra.mxu1 %v3379_v37  ;;  %v3410_v47 = vand.u32 4294901760, %v25_v40  ;;  %v3417_v49 = vand.u32 4294901760, %v100_v33  ;;  %v112_v50 = vsub.f32 %v3355_v28, %v3385_v39  ;;  %v3422_v51 = vand.u32 4294901760, %v3391_v41 }
   0xf   :  { %191 = vmatpush.msra.mxu2 %v3323_v18  ;;  %243 = vmatpush.msra.mxu3 %v3299_v10  ;;  %v3428_v53 = vsub.f32 %v27_v25, %v3370_v34  ;;  %v3430_v54 = vand.u32 4294901760, %v106_v42  ;;  %v118_v55 = vsub.f32 %v3376_v36, %v3403_v45  ;;  %v3438_v56 = vand.u32 4294901760, %v24_v48 }
  0x10   :  { %49 = vmatpush.msra.mxu0 %v3301_v11  ;;  %90 = vmatpush.msra.mxu1 %v3381_v38  ;;  %5213 = vst [vmem:[#allocation7_spill] sm:$0xff] %v3422_v51  ;;  %v3441_v57 = vand.u32 4294901760, %v3406_v46  ;;  %v3447_v59 = vsub.f32 %v26_v35, %v3400_v44  ;;  %v3451_v60 = vand.u32 4294901760, %v23_v52  ;;  %v3455_v61 = vand.u32 4294901760, %v112_v50 }
  0x11   :  { %5214 = vst [vmem:[#allocation8_spill] sm:$0xff] %v3428_v53  ;;  %194 = vmatpush.msra.mxu2 %v3329_v20  ;;  %245 = vmatpush.msra.mxu3 %v3301_v11  ;;  %v124_v62 = vsub.f32 %v3391_v41, %v3422_v51  ;;  %v3460_v63 = vand.u32 4294901760, %v3428_v53  ;;  %v3466_v1 = vsub.f32 %v25_v40, %v3410_v47  ;;  %v3470_v2 = vand.u32 4294901760, %v22_v58 }
  0x12   :  { %51 = vmatpush.msra.mxu0 %v3320_v17  ;;  %96 = vmatpush.msra.mxu1 %v3398_v43  ;;  %5215 = vst [vmem:[#allocation9_spill] sm:$0xff] %v3447_v59  ;;  %v3474_v6 = vand.u32 4294901760, %v118_v55  ;;  %v130_v7 = vsub.f32 %v3406_v46, %v3441_v57  ;;  %v3479_v8 = vand.u32 4294901760, %v3447_v59  ;;  %v3482_v12 = vsub.f32 %v24_v48, %v3438_v56 }
  0x13   :  { %197 = vmatpush.msra.mxu2 %v3355_v28  ;;  %247 = vmatpush.msra.mxu3 %v3320_v17  ;;  %5216 = vst [vmem:[#allocation10_spill] sm:$0xff] %v3455_v61  ;;  %v3486_v13 = vand.u32 4294901760, %v21_v0  ;;  %v3490_v19 = vand.u32 4294901760, %v124_v62  ;;  %v136_v25 = vsub.f32 %v3428_v53, %v3460_v63  ;;  %v3495_v29 = vand.u32 4294901760, %v3466_v1 }
  0x14   :  { %53 = vmatpush.msra.mxu0 %v3342_v24  ;;  %102 = vmatpush.msra.mxu1 %v3417_v49  ;;  %5217 = vst [vmem:[#allocation11_spill] sm:$0xff] %v3466_v1  ;;  %v3498_v30 = vsub.f32 %v23_v52, %v3451_v60  ;;  %v3504_v31 = vand.u32 4294901760, %v130_v7  ;;  %v142_v33 = vsub.f32 %v3447_v59, %v3479_v8  ;;  %v3509_v35 = vand.u32 4294901760, %v3482_v12 }
  0x15   :  { %200 = vmatpush.msra.mxu2 %v3376_v36  ;;  %249 = vmatpush.msra.mxu3 %v3342_v24  ;;  %5218 = vst [vmem:[#allocation12_spill] sm:$0xff] %v3482_v12  ;;  %v3512_v40 = vsub.f32 %v22_v58, %v3470_v2  ;;  %v3518_v42 = vand.u32 4294901760, %v136_v25  ;;  %v148_v48 = vsub.f32 %v3466_v1, %v3495_v29  ;;  %vm3180_vm6 = vcmask 64512  }
  0x16   :  { %55 = vmatpush.msra.mxu0 %v3365_v32  ;;  %108 = vmatpush.msra.mxu1 %v3430_v54  ;;  %5219 = vst [vmem:[#allocation13_spill] sm:$0xff] %v3495_v29  ;;  %v3523_v50 = vand.u32 4294901760, %v3498_v30  ;;  %v3526_v52 = vsub.f32 %v21_v0, %v3486_v13  ;;  %v3532_v55 = vand.u32 4294901760, %v142_v33  ;;  %v154_v58 = vsub.f32 %v3482_v12, %v3509_v35 }
  0x17   :  { %203 = vmatpush.msra.mxu2 %v3391_v41  ;;  %251 = vmatpush.msra.mxu3 %v3365_v32  ;;  %5220 = vst [vmem:[#allocation14_spill] sm:$0xff] %v3498_v30  ;;  %v3537_v62 = vand.u32 4294901760, %v3512_v40  ;;  %v3543_v0 = vand.u32 4294901760, %v148_v48 }
  0x18   :  { %57 = vmatpush.msra.mxu0 %v3370_v34  ;;  %114 = vmatpush.msra.mxu1 %v3455_v61  ;;  %v160_v7 = vsub.f32 %v3498_v30, %v3523_v50  ;;  %v3548_v25 = vand.u32 4294901760, %v3526_v52  ;;  %v3554_v33 = vand.u32 4294901760, %v154_v58 }
  0x19   :  { %206 = vmatpush.msra.mxu2 %v3406_v46  ;;  %253 = vmatpush.msra.mxu3 %v3370_v34  ;;  %v166_v48 = vsub.f32 %v3512_v40, %v3537_v62 }
  0x1a   :  { %59 = vmatpush.msra.mxu0 %v3400_v44  ;;  %120 = vmatpush.msra.mxu1 %v3474_v6  ;;  %v3572_v58 = vand.u32 4294901760, %v160_v7 }
  0x1b   :  { %209 = vmatpush.msra.mxu2 %v3428_v53  ;;  %255 = vmatpush.msra.mxu3 %v3400_v44 }
  0x1c   :  { %61 = vmatpush.msra.mxu0 %v3410_v47  ;;  %126 = vmatpush.msra.mxu1 %v3490_v19 }
  0x1d   :  { %212 = vmatpush.msra.mxu2 %v3447_v59  ;;  %257 = vmatpush.msra.mxu3 %v3410_v47  ;;  %v3579_v59 = vand.u32 4294901760, %v166_v48 }
  0x1e   :  { %63 = vmatpush.msra.mxu0 %v3438_v56  ;;  %132 = vmatpush.msra.mxu1 %v3504_v31 }
  0x1f   :  { %215 = vmatpush.msra.mxu2 %v3466_v1  ;;  %259 = vmatpush.msra.mxu3 %v3438_v56  ;;  %v3563_v1 = vld [vmem:[%s5011_s0] sm:$0xff] }
  0x20   :  { %65 = vmatpush.msra.mxu0 %v3451_v60  ;;  %138 = vmatpush.msra.mxu1 %v3518_v42 }
  0x21   :  { %218 = vmatpush.msra.mxu2 %v3482_v12  ;;  %261 = vmatpush.msra.mxu3 %v3451_v60  ;;  %v3568_v12 = vld [vmem:[%s5011_s0 + $0x8] sm:$0xff] }
  0x22   :  { %67 = vmatpush.msra.mxu0 %v3470_v2  ;;  %144 = vmatpush.msra.mxu1 %v3532_v55  ;;  %5221 = vst [vmem:[#allocation15_spill] sm:$0xff] %v3568_v12  ;;  %v37_v53 = vmul.f32 %v3568_v12, %v3563_v1 }
  0x23   :  { %221 = vmatpush.msra.mxu2 %v3498_v30  ;;  %263 = vmatpush.msra.mxu3 %v3470_v2  ;;  %v172_v30 = vsub.f32 %v3526_v52, %v3548_v25 }
  0x24   :  { %69 = vmatpush.msra.mxu0 %v3486_v13  ;;  %150 = vmatpush.msra.mxu1 %v3543_v0  ;;  %v3594_v48 = vand.u32 4294901760, %v37_v53 }
  0x25   :  { %224 = vmatpush.msra.mxu2 %v3512_v40  ;;  %265 = vmatpush.msra.mxu3 %v3486_v13  ;;  %v3587_v7 = vand.u32 4294901760, %v172_v30 }
  0x26   :  { %276 = vmatpush.msrb.mxu0 %v3333_v21  ;;  %156 = vmatpush.msra.mxu1 %v3554_v33  ;;  %v71_v30 = vsub.f32 %v37_v53, %v3594_v48 }
  0x27   :  { %227 = vmatpush.msra.mxu2 %v3526_v52  ;;  %426 = vmatpush.msrb.mxu3 %v3379_v37 }
  0x28   :  { %280 = vmatpush.msrb.mxu0 %v3336_v22  ;;  %162 = vmatpush.msra.mxu1 %v3572_v58  ;;  %v72_v12 = vand.u32 4294901760, %v71_v30 }
  0x29   :  { %381 = vmatpush.msrb.mxu2 %v3282_v3  ;;  %432 = vmatpush.msrb.mxu3 %v3381_v38 }
  0x2a   :  { %284 = vmatpush.msrb.mxu0 %v3340_v23  ;;  %168 = vmatpush.msra.mxu1 %v3579_v59  ;;  %v73_v53 = vsub.f32 %v71_v30, %v72_v12 }
  0x2b   :  { %383 = vmatpush.msrb.mxu2 %v3284_v4  ;;  %438 = vmatpush.msrb.mxu3 %v3398_v43 }
  0x2c   :  { %288 = vmatpush.msrb.mxu0 %v3348_v26  ;;  %174 = vmatpush.msra.mxu1 %v3587_v7 }
  0x2d   :  { %385 = vmatpush.msrb.mxu2 %v3286_v5  ;;  %444 = vmatpush.msrb.mxu3 %v3417_v49 }
  0x2e   :  { %292 = vmatpush.msrb.mxu0 %v3352_v27  ;;  %343 = vmatpush.msrb.mxu1 %v3282_v3 }
  0x2f   :  { %387 = vmatpush.msrb.mxu2 %v3297_v9  ;;  %450 = vmatpush.msrb.mxu3 %v3430_v54 }
  0x30   :  { %296 = vmatpush.msrb.mxu0 %v3385_v39  ;;  %345 = vmatpush.msrb.mxu1 %v3284_v4 }
  0x31   :  { %389 = vmatpush.msrb.mxu2 %v3299_v10  ;;  %456 = vmatpush.msrb.mxu3 %v3455_v61  ;;  %v74_v61 = vand.u32 4294901760, %v73_v53  ;;  %v5224_v53 = vld [vmem:[#allocation11_spill] sm:$0xff] }
  0x32   :  { %300 = vmatpush.msrb.mxu0 %v3403_v45  ;;  %347 = vmatpush.msrb.mxu1 %v3286_v5 }
  0x33   :  { %391 = vmatpush.msrb.mxu2 %v3301_v11  ;;  %462 = vmatpush.msrb.mxu3 %v3474_v6 }
  0x34   :  { %304 = vmatpush.msrb.mxu0 %v3422_v51  ;;  %349 = vmatpush.msrb.mxu1 %v3297_v9 }
  0x35   :  { %393 = vmatpush.msrb.mxu2 %v3320_v17  ;;  %468 = vmatpush.msrb.mxu3 %v3490_v19 }
  0x36   :  { %308 = vmatpush.msrb.mxu0 %v3441_v57  ;;  %351 = vmatpush.msrb.mxu1 %v3299_v10 }
  0x37   :  { %395 = vmatpush.msrb.mxu2 %v3342_v24  ;;  %474 = vmatpush.msrb.mxu3 %v3504_v31 }
  0x38   :  { %312 = vmatpush.msrb.mxu0 %v3460_v63  ;;  %353 = vmatpush.msrb.mxu1 %v3301_v11 }
  0x39   :  { %397 = vmatpush.msrb.mxu2 %v3365_v32  ;;  %480 = vmatpush.msrb.mxu3 %v3518_v42 }
  0x3a   :  { %316 = vmatpush.msrb.mxu0 %v3479_v8  ;;  %355 = vmatpush.msrb.mxu1 %v3320_v17 }
  0x3b   :  { %399 = vmatpush.msrb.mxu2 %v3370_v34  ;;  %75 = vmatmul.f32.vlgmr.msra.gmra.mxu0 %v74_v61  ;;  %v379_v61 = vmul.f32 %v3563_v1, %v3563_v1  ;;  %v5225_v1 = vld [vmem:[#allocation12_spill] sm:$0xff] }
  0x3c   :  { %320 = vmatpush.msrb.mxu0 %v3495_v29  ;;  %357 = vmatpush.msrb.mxu1 %v3342_v24 }
  0x3d   :  { %401 = vmatpush.msrb.mxu2 %v3400_v44  ;;  %486 = vmatpush.msrb.mxu3 %v3532_v55 }
  0x3e   :  { %324 = vmatpush.msrb.mxu0 %v3509_v35  ;;  %359 = vmatpush.msrb.mxu1 %v3365_v32 }
  0x3f   :  { %403 = vmatpush.msrb.mxu2 %v3410_v47  ;;  %492 = vmatpush.msrb.mxu3 %v3543_v0 }
  0x40   :  { %328 = vmatpush.msrb.mxu0 %v3523_v50  ;;  %361 = vmatpush.msrb.mxu1 %v3370_v34 }
  0x41   :  { %230 = vmatmul.f32.vlgmr.msra.gmra.mxu2 %v71_v30  ;;  %269 = vmatmul.f32.vlgmr.msra.gmra.mxu3 %v72_v12  ;;  %v5222_v12 = vld [vmem:[#allocation8_spill] sm:$0xff]  ;;  %v3690_v30 = vand.u32 4294901760, %v379_v61 }
  0x42   :  { %332 = vmatpush.msrb.mxu0 %v3537_v62  ;;  %363 = vmatpush.msrb.mxu1 %v3400_v44 }
  0x43   :  { %405 = vmatpush.msrb.mxu2 %v3438_v56  ;;  %498 = vmatpush.msrb.mxu3 %v3554_v33 }
  0x44   :  { %336 = vmatpush.msrb.mxu0 %v3548_v25  ;;  %365 = vmatpush.msrb.mxu1 %v3410_v47 }
  0x45   :  { %407 = vmatpush.msrb.mxu2 %v3451_v60  ;;  %176 = vmatmul.f32.vlgmr.msra.gmra.mxu1 %v3594_v48 }
  0x46   :  { %524 = vmatpush.msra.mxu0 %v3311_v14  ;;  %367 = vmatpush.msrb.mxu1 %v3438_v56 }
  0x47   :  { %409 = vmatpush.msrb.mxu2 %v3470_v2  ;;  %504 = vmatpush.msrb.mxu3 %v3572_v58 }
  0x48   :  { %527 = vmatpush.msra.mxu0 %v3314_v15  ;;  %369 = vmatpush.msrb.mxu1 %v3451_v60 }
  0x49   :  { %411 = vmatpush.msrb.mxu2 %v3486_v13  ;;  %510 = vmatpush.msrb.mxu3 %v3579_v59 }
  0x4a   :  { %530 = vmatpush.msra.mxu0 %v3317_v16  ;;  %371 = vmatpush.msrb.mxu1 %v3470_v2 }
  0x4b   :  { %618 = vmatpush.msra.mxu2 %v3333_v21  ;;  %516 = vmatpush.msrb.mxu3 %v3587_v7 }
  0x4c   :  { %533 = vmatpush.msra.mxu0 %v3323_v18  ;;  %373 = vmatpush.msrb.mxu1 %v3486_v13 }
  0x4d   :  { %338 = vmatmul.f32.vlgmr.msrb.gmra.mxu0 %v3594_v48  ;;  %622 = vmatpush.msra.mxu2 %v3336_v22 }
  0x4e   :  { %536 = vmatpush.msra.mxu0 %v3329_v20  ;;  %577 = vmatpush.msra.mxu1 %v3282_v3 }
  0x4f   :  { %685 = vmatpush.msra.mxu3 %v3282_v3  ;;  %375 = vmatmul.f32.vlgmr.msrb.gmra.mxu1 %v3594_v48  ;;  %v5223_v48 = vld [vmem:[#allocation9_spill] sm:$0xff] }
  0x50   :  { %539 = vmatpush.msra.mxu0 %v3355_v28  ;;  %579 = vmatpush.msra.mxu1 %v3284_v4 }
  0x51   :  { %626 = vmatpush.msra.mxu2 %v3340_v23  ;;  %687 = vmatpush.msra.mxu3 %v3284_v4 }
  0x52   :  { %542 = vmatpush.msra.mxu0 %v3376_v36  ;;  %581 = vmatpush.msra.mxu1 %v3286_v5 }
  0x53   :  { %630 = vmatpush.msra.mxu2 %v3348_v26  ;;  %689 = vmatpush.msra.mxu3 %v3286_v5 }
  0x54   :  { %545 = vmatpush.msra.mxu0 %v3391_v41  ;;  %583 = vmatpush.msra.mxu1 %v3297_v9 }
  0x55   :  { %634 = vmatpush.msra.mxu2 %v3352_v27  ;;  %691 = vmatpush.msra.mxu3 %v3297_v9  ;;  %v3703_v27 = vsub.f32 %v379_v61, %v3690_v30 }
  0x56   :  { %548 = vmatpush.msra.mxu0 %v3406_v46  ;;  %585 = vmatpush.msra.mxu1 %v3299_v10 }
  0x57   :  { %638 = vmatpush.msra.mxu2 %v3385_v39  ;;  %693 = vmatpush.msra.mxu3 %v3299_v10  ;;  %v5226_v39 = vld [vmem:[#allocation14_spill] sm:$0xff] }
  0x58   :  { %551 = vmatpush.msra.mxu0 %v5222_v12  ;;  %587 = vmatpush.msra.mxu1 %v3301_v11 }
  0x59   :  { %642 = vmatpush.msra.mxu2 %v3403_v45  ;;  %695 = vmatpush.msra.mxu3 %v3301_v11 }
  0x5a   :  { %554 = vmatpush.msra.mxu0 %v5223_v48  ;;  %589 = vmatpush.msra.mxu1 %v3320_v17 }
  0x5b   :  { %646 = vmatpush.msra.mxu2 %v3422_v51  ;;  %697 = vmatpush.msra.mxu3 %v3320_v17  ;;  %v414_v51 = vand.u32 4294901760, %v3703_v27 }
  0x5c   :  { %557 = vmatpush.msra.mxu0 %v5224_v53  ;;  %591 = vmatpush.msra.mxu1 %v3342_v24 }
  0x5d   :  { %650 = vmatpush.msra.mxu2 %v3441_v57  ;;  %699 = vmatpush.msra.mxu3 %v3342_v24  ;;  %v415_v61 = vsub.f32 %v3703_v27, %v414_v51 }
  0x5e   :  { %560 = vmatpush.msra.mxu0 %v5225_v1  ;;  %593 = vmatpush.msra.mxu1 %v3365_v32 }
  0x5f   :  { %654 = vmatpush.msra.mxu2 %v3460_v63  ;;  %701 = vmatpush.msra.mxu3 %v3365_v32 }
  0x60   :  { %563 = vmatpush.msra.mxu0 %v5226_v39  ;;  %595 = vmatpush.msra.mxu1 %v3370_v34 }
  0x61   :  { %658 = vmatpush.msra.mxu2 %v3479_v8  ;;  %703 = vmatpush.msra.mxu3 %v3370_v34 }
  0x62   :  { %566 = vmatpush.msra.mxu0 %v3512_v40  ;;  %597 = vmatpush.msra.mxu1 %v3400_v44 }
  0x63   :  { %662 = vmatpush.msra.mxu2 %v3495_v29  ;;  %705 = vmatpush.msra.mxu3 %v3400_v44  ;;  %v416_v29 = vand.u32 4294901760, %v415_v61  ;;  %v1087_v61 = vld [vmem:[%s5014_s3 + $0x30] sm:$0xff] }
  0x64   :  { %569 = vmatpush.msra.mxu0 %v3526_v52  ;;  %599 = vmatpush.msra.mxu1 %v3410_v47 }
  0x65   :  { %666 = vmatpush.msra.mxu2 %v3509_v35  ;;  %707 = vmatpush.msra.mxu3 %v3410_v47 }
  0x66   :  { %723 = vmatpush.msrb.mxu0 %v3282_v3  ;;  %601 = vmatpush.msra.mxu1 %v3438_v56 }
  0x67   :  { %670 = vmatpush.msra.mxu2 %v3523_v50  ;;  %709 = vmatpush.msra.mxu3 %v3438_v56 }
  0x68   :  { %725 = vmatpush.msrb.mxu0 %v3284_v4  ;;  %603 = vmatpush.msra.mxu1 %v3451_v60 }
  0x69   :  { %674 = vmatpush.msra.mxu2 %v3537_v62  ;;  %711 = vmatpush.msra.mxu3 %v3451_v60 }
  0x6a   :  { %727 = vmatpush.msrb.mxu0 %v3286_v5  ;;  %605 = vmatpush.msra.mxu1 %v3470_v2 }
  0x6b   :  { %678 = vmatpush.msra.mxu2 %v3548_v25  ;;  %713 = vmatpush.msra.mxu3 %v3470_v2 }
  0x6c   :  { %729 = vmatpush.msrb.mxu0 %v3297_v9  ;;  %607 = vmatpush.msra.mxu1 %v3486_v13 }
  0x6d   :  { %417 = vmatmul.f32.vlgmr.msrb.gmra.mxu2 %v416_v29  ;;  %715 = vmatpush.msra.mxu3 %v3486_v13 }
  0x6e   :  { %731 = vmatpush.msrb.mxu0 %v3299_v10  ;;  %768 = vmatpush.msrb.mxu1 %v3379_v37 }
  0x6f   :  { %866 = vmatpush.msrb.mxu2 %v3311_v14  ;;  %518 = vmatmul.f32.vlgmr.msrb.gmra.mxu3 %v3690_v30  ;;  %v5227_v14 = vld [vmem:[#allocation10_spill] sm:$0xff] }
  0x70   :  { %733 = vmatpush.msrb.mxu0 %v3301_v11  ;;  %774 = vmatpush.msrb.mxu1 %v3381_v38 }
  0x71   :  { %869 = vmatpush.msrb.mxu2 %v3314_v15  ;;  %919 = vmatpush.msrb.mxu3 %v3282_v3  ;;  %v1096_v15 = vld [vmem:[%s5014_s3 + $0x78] sm:$0xff] }
  0x72   :  { %735 = vmatpush.msrb.mxu0 %v3320_v17  ;;  %780 = vmatpush.msrb.mxu1 %v3398_v43 }
  0x73   :  { %872 = vmatpush.msrb.mxu2 %v3317_v16  ;;  %921 = vmatpush.msrb.mxu3 %v3284_v4  ;;  %v1095_v16 = vld [vmem:[%s5014_s3 + $0x70] sm:$0xff] }
  0x74   :  { %737 = vmatpush.msrb.mxu0 %v3342_v24  ;;  %786 = vmatpush.msrb.mxu1 %v3417_v49  ;;  %v1091_v49 = vld [vmem:[%s5014_s3 + $0x50] sm:$0xff] }
  0x75   :  { %875 = vmatpush.msrb.mxu2 %v3323_v18  ;;  %923 = vmatpush.msrb.mxu3 %v3286_v5  ;;  %v3782_v18 = vand.u32 4294901760, %v1096_v15 }
  0x76   :  { %739 = vmatpush.msrb.mxu0 %v3365_v32  ;;  %792 = vmatpush.msrb.mxu1 %v3430_v54 }
  0x77   :  { %878 = vmatpush.msrb.mxu2 %v3329_v20  ;;  %925 = vmatpush.msrb.mxu3 %v3297_v9  ;;  %v1094_v20 = vld [vmem:[%s5014_s3 + $0x68] sm:$0xff]  ;;  %v3801_v37 = vsub.f32 %v1096_v15, %v3782_v18 }
  0x78   :  { %741 = vmatpush.msrb.mxu0 %v3370_v34  ;;  %798 = vmatpush.msrb.mxu1 %v5227_v14  ;;  %v3803_v38 = vand.u32 4294901760, %v1094_v20 }
  0x79   :  { %881 = vmatpush.msrb.mxu2 %v3355_v28  ;;  %927 = vmatpush.msrb.mxu3 %v3299_v10  ;;  %v3791_v28 = vand.u32 4294901760, %v1095_v16  ;;  %5228 = vst [vmem:[#allocation8_spill] sm:$0xff] %v3801_v37 }
  0x7a   :  { %743 = vmatpush.msrb.mxu0 %v3400_v44  ;;  %804 = vmatpush.msrb.mxu1 %v3474_v6  ;;  %v3828_v54 = vsub.f32 %v1094_v20, %v3803_v38  ;;  %v1086_v20 = vld [vmem:[%s5014_s3 + $0x28] sm:$0xff] }
  0x7b   :  { %884 = vmatpush.msrb.mxu2 %v3376_v36  ;;  %929 = vmatpush.msrb.mxu3 %v3301_v11  ;;  %v1093_v36 = vld [vmem:[%s5014_s3 + $0x60] sm:$0xff]  ;;  %v3813_v43 = vsub.f32 %v1095_v16, %v3791_v28 }
  0x7c   :  { %745 = vmatpush.msrb.mxu0 %v3410_v47  ;;  %810 = vmatpush.msrb.mxu1 %v3490_v19  ;;  %5232 = vst [vmem:[#allocation14_spill] sm:$0xff] %v3828_v54  ;;  %v1090_v19 = vld [vmem:[%s5014_s3 + $0x48] sm:$0xff] }
  0x7d   :  { %887 = vmatpush.msrb.mxu2 %v3391_v41  ;;  %931 = vmatpush.msrb.mxu3 %v3320_v17  ;;  %v1092_v41 = vld [vmem:[%s5014_s3 + $0x58] sm:$0xff]  ;;  %5229 = vst [vmem:[#allocation9_spill] sm:$0xff] %v3813_v43 }
  0x7e   :  { %747 = vmatpush.msrb.mxu0 %v3438_v56  ;;  %816 = vmatpush.msrb.mxu1 %v3504_v31  ;;  %v3830_v6 = vand.u32 4294901760, %v1092_v41  ;;  %v3845_v31 = vand.u32 4294901760, %v1091_v49 }
  0x7f   :  { %890 = vmatpush.msrb.mxu2 %v3406_v46  ;;  %933 = vmatpush.msrb.mxu3 %v3342_v24  ;;  %v3815_v46 = vand.u32 4294901760, %v1093_v36 }
  0x80   :  { %749 = vmatpush.msrb.mxu0 %v3451_v60  ;;  %822 = vmatpush.msrb.mxu1 %v3518_v42  ;;  %5233 = vst [vmem:[#allocation10_spill] sm:$0xff] %v3830_v6  ;;  %v1089_v42 = vld [vmem:[%s5014_s3 + $0x40] sm:$0xff] }
  0x81   :  { %893 = vmatpush.msrb.mxu2 %v5222_v12  ;;  %935 = vmatpush.msrb.mxu3 %v3365_v32  ;;  %5230 = vst [vmem:[#allocation11_spill] sm:$0xff] %v3815_v46  ;;  %v3843_v29 = vsub.f32 %v1093_v36, %v3815_v46  ;;  %v3879_v12 = vand.u32 4294901760, %v1089_v42 }
  0x82   :  { %751 = vmatpush.msrb.mxu0 %v3470_v2  ;;  %828 = vmatpush.msrb.mxu1 %v3532_v55  ;;  %v3858_v55 = vand.u32 4294901760, %v3828_v54 }
  0x83   :  { %896 = vmatpush.msrb.mxu2 %v5223_v48  ;;  %937 = vmatpush.msrb.mxu3 %v3370_v34  ;;  %5235 = vst [vmem:[#allocation17_spill] sm:$0xff] %v3843_v29 }
  0x84   :  { %753 = vmatpush.msrb.mxu0 %v3486_v13  ;;  %834 = vmatpush.msrb.mxu1 %v3543_v0  ;;  %5236 = vst [vmem:[#allocation18_spill] sm:$0xff] %v3858_v55  ;;  %v3861_v0 = vsub.f32 %v1092_v41, %v3830_v6  ;;  %v1171_v48 = vsub.f32 %v3828_v54, %v3858_v55 }
  0x85   :  { %572 = vmatmul.f32.vlgmr.msra.gmra.mxu0 %v3703_v27  ;;  %899 = vmatpush.msrb.mxu2 %v5224_v53 }
  0x86   :  { %840 = vmatpush.msrb.mxu1 %v3554_v33  ;;  %960 = vmatpush.msra.mxu0 %v3333_v21  ;;  %v3825_v21 = vand.u32 4294901760, %v3801_v37  ;;  %5237 = vst [vmem:[#allocation19_spill] sm:$0xff] %v3861_v0  ;;  %v3926_v36 = vand.u32 4294901760, %v1171_v48 }
  0x87   :  { %939 = vmatpush.msrb.mxu3 %v3400_v44  ;;  %680 = vmatmul.f32.vlgmr.msra.gmra.mxu2 %v3690_v30 }
  0x88   :  { %964 = vmatpush.msra.mxu0 %v3336_v22  ;;  %846 = vmatpush.msrb.mxu1 %v3572_v58  ;;  %5231 = vst [vmem:[#allocation12_spill] sm:$0xff] %v3825_v21  ;;  %v3840_v22 = vand.u32 4294901760, %v3813_v43  ;;  %v3877_v58 = vsub.f32 %v1091_v49, %v3845_v31 }
  0x89   :  { %902 = vmatpush.msrb.mxu2 %v5225_v1  ;;  %941 = vmatpush.msrb.mxu3 %v3410_v47  ;;  %v5245_v1 = vld [vmem:[#allocation6_spill] sm:$0xff]  ;;  %5249 = vst [vmem:[#allocation25_spill] sm:$0xff] %v3926_v36 }
  0x8a   :  { %717 = vmatmul.f32.vlgmr.msra.gmra.mxu3 %v3690_v30  ;;  %968 = vmatpush.msra.mxu0 %v3340_v23  ;;  %5234 = vst [vmem:[#allocation16_spill] sm:$0xff] %v3840_v22  ;;  %v1159_v23 = vsub.f32 %v3801_v37, %v3825_v21  ;;  %v1165_v27 = vsub.f32 %v3813_v43, %v3840_v22  ;;  %v3893_v30 = vand.u32 4294901760, %v3861_v0  ;;  %v3914_v16 = vand.u32 4294901760, %v3877_v58 }
  0x8b   :  { %852 = vmatpush.msrb.mxu1 %v3579_v59  ;;  %905 = vmatpush.msrb.mxu2 %v5226_v39  ;;  %v3863_v59 = vand.u32 4294901760, %v1090_v19  ;;  %v5238_v39 = vld [vmem:[#allocation15_spill] sm:$0xff]  ;;  %5240 = vst [vmem:[#allocation20_spill] sm:$0xff] %v3877_v58 }
  0x8c   :  { %943 = vmatpush.msrb.mxu3 %v3438_v56  ;;  %611 = vmatmul.f32.vlgmr.msra.gmra.mxu1 %v414_v51  ;;  %v721_v33 = vmul.f32 %v5238_v39, %v5238_v39  ;;  %v3874_v51 = vand.u32 4294901760, %v3843_v29  ;;  %5243 = vst [vmem:[#allocation21_spill] sm:$0xff] %v3893_v30  ;;  %v3909_v14 = vand.u32 4294901760, %v1165_v27  ;;  %v1183_v41 = vsub.f32 %v3861_v0, %v3893_v30 }
  0x8d   :  { %972 = vmatpush.msra.mxu0 %v3348_v26  ;;  %858 = vmatpush.msrb.mxu1 %v3587_v7  ;;  %v1088_v26 = vld [vmem:[%s5014_s3 + $0x38] sm:$0xff]  ;;  %v5241_v7 = vld [vmem:[#allocation5_spill] sm:$0xff]  ;;  %v3896_v53 = vsub.f32 %v1090_v19, %v3863_v59  ;;  %5247 = vst [vmem:[#allocation23_spill] sm:$0xff] %v3914_v16  ;;  %v3933_v19 = vand.u32 4294901760, %v1087_v61  ;;  %v1189_v27 = vsub.f32 %v3877_v58, %v3914_v16 }
  0x8e   :  { %908 = vmatpush.msrb.mxu2 %v3512_v40  ;;  %945 = vmatpush.msrb.mxu3 %v3451_v60  ;;  %5239 = vst [vmem:[#allocation15_spill] sm:$0xff] %v3874_v51  ;;  %v3888_v40 = vand.u32 4294901760, %v1159_v23  ;;  %v1177_v15 = vsub.f32 %v3843_v29, %v3874_v51  ;;  %v1085_v23 = vld [vmem:[%s5014_s3 + $0x20] sm:$0xff] }
  0x8f   :  { %976 = vmatpush.msra.mxu0 %v5241_v7  ;;  %1027 = vmatpush.msra.mxu1 %v3282_v3  ;;  %5244 = vst [vmem:[#allocation22_spill] sm:$0xff] %v3896_v53  ;;  %v3900_v3 = vand.u32 4294901760, %v1088_v26  ;;  %v3931_v49 = vand.u32 4294901760, %v3896_v53  ;;  %v3964_v7 = vand.u32 4294901760, %v1183_v41  ;;  %v3981_v41 = vand.u32 4294901760, %v1189_v27 }
  0x90   :  { %911 = vmatpush.msrb.mxu2 %v3526_v52  ;;  %947 = vmatpush.msrb.mxu3 %v3470_v2  ;;  %5242 = vst [vmem:[#allocation5_spill] sm:$0xff] %v3888_v40  ;;  %v3902_v52 = vand.u32 4294901760, %v721_v33  ;;  %v3948_v39 = vand.u32 4294901760, %v1177_v15  ;;  %v3971_v15 = vand.u32 4294901760, %v1085_v23 }
  0x91   :  { %980 = vmatpush.msra.mxu0 %v5245_v1  ;;  %1029 = vmatpush.msra.mxu1 %v3284_v4  ;;  %5246 = vst [vmem:[#allocation6_spill] sm:$0xff] %v3909_v14  ;;  %v3917_v4 = vsub.f32 %v1089_v42, %v3879_v12  ;;  %v3941_v42 = vsub.f32 %v1088_v26, %v3900_v3  ;;  %v1084_v26 = vld [vmem:[%s5014_s3 + $0x18] sm:$0xff] }
  0x92   :  { %1116 = vmatpush.msra.mxu2 %v3782_v18  ;;  %949 = vmatpush.msrb.mxu3 %v3486_v13  ;;  %5250 = vst [vmem:[#allocation26_spill] sm:$0xff] %v3931_v49  ;;  %v1195_v48 = vsub.f32 %v3896_v53, %v3931_v49  ;;  %v3969_v1 = vsub.f32 %v1087_v61, %v3933_v19 }
  0x93   :  { %5248 = vst [vmem:[#allocation24_spill] sm:$0xff] %v3917_v4  ;;  %984 = vmatpush.msra.mxu0 %v3403_v45  ;;  %1031 = vmatpush.msra.mxu1 %v3286_v5  ;;  %v5251_v45 = vld [vmem:[#allocation7_spill] sm:$0xff]  ;;  %v3938_v5 = vsub.f32 %v721_v33, %v3902_v52  ;;  %v3955_v33 = vand.u32 4294901760, %v1086_v20 }
  0x94   :  { %1118 = vmatpush.msra.mxu2 %v3791_v28  ;;  %1161 = vmatpush.msra.mxu3 %v3888_v40  ;;  %5252 = vst [vmem:[#allocation7_spill] sm:$0xff] %v3941_v42  ;;  %v3997_v27 = vand.u32 4294901760, %v1195_v48 }
  0x95   :  { %988 = vmatpush.msra.mxu0 %v5251_v45  ;;  %1033 = vmatpush.msra.mxu1 %v3297_v9  ;;  %5253 = vst [vmem:[#allocation27_spill] sm:$0xff] %v3948_v39  ;;  %v3953_v9 = vand.u32 4294901760, %v3917_v4  ;;  %v3986_v45 = vsub.f32 %v1086_v20, %v3955_v33  ;;  %v4003_v20 = vsub.f32 %v1085_v23, %v3971_v15 }
  0x96   :  { %1120 = vmatpush.msra.mxu2 %v3803_v38  ;;  %1167 = vmatpush.msra.mxu3 %v3909_v14  ;;  %5255 = vst [vmem:[#allocation29_spill] sm:$0xff] %v3955_v33  ;;  %v5266_v14 = vld [vmem:[#allocation13_spill] sm:$0xff] }
  0x97   :  { %5254 = vst [vmem:[#allocation28_spill] sm:$0xff] %v3953_v9  ;;  %992 = vmatpush.msra.mxu0 %v3441_v57  ;;  %1035 = vmatpush.msra.mxu1 %v3299_v10  ;;  %v3976_v10 = vand.u32 4294901760, %v3941_v42  ;;  %v756_v57 = vand.u32 4294901760, %v3938_v5  ;;  %v1201_v61 = vsub.f32 %v3917_v4, %v3953_v9 }
  0x98   :  { %1122 = vmatpush.msra.mxu2 %v3815_v46  ;;  %1173 = vmatpush.msra.mxu3 %v3926_v36  ;;  %5256 = vst [vmem:[#allocation30_spill] sm:$0xff] %v3964_v7  ;;  %v1082_v36 = vld [vmem:[%s5014_s3 + $0x8] sm:$0xff] }
  0x99   :  { %5257 = vst [vmem:[#allocation31_spill] sm:$0xff] %v3969_v1  ;;  %996 = vmatpush.msra.mxu0 %v3460_v63  ;;  %1037 = vmatpush.msra.mxu1 %v3301_v11  ;;  %v3988_v63 = vand.u32 4294901760, %v1084_v26  ;;  %v1083_v11 = vld [vmem:[%s5014_s3 + $0x10] sm:$0xff]  ;;  %v4017_v23 = vand.u32 4294901760, %v1201_v61  ;;  %v4030_v40 = vand.u32 4294901760, %v1082_v36 }
  0x9a   :  { %5258 = vst [vmem:[#allocation32_spill] sm:$0xff] %v3971_v15  ;;  %1124 = vmatpush.msra.mxu2 %v3830_v6  ;;  %1179 = vmatpush.msra.mxu3 %v3948_v39  ;;  %v4000_v39 = vand.u32 4294901760, %v3969_v1  ;;  %v4013_v48 = vand.u32 4294901760, %v1083_v11 }
  0x9b   :  { %5259 = vst [vmem:[#allocation33_spill] sm:$0xff] %v3976_v10  ;;  %1000 = vmatpush.msra.mxu0 %v3479_v8  ;;  %1039 = vmatpush.msra.mxu1 %v3320_v17  ;;  %v1207_v17 = vsub.f32 %v3941_v42, %v3976_v10  ;;  %v757_v8 = vsub.f32 %v3938_v5, %v756_v57 }
  0x9c   :  { %5260 = vst [vmem:[#allocation34_spill] sm:$0xff] %v3981_v41  ;;  %1126 = vmatpush.msra.mxu2 %v3845_v31  ;;  %1185 = vmatpush.msra.mxu3 %v3964_v7  ;;  %v4020_v7 = vand.u32 4294901760, %v3986_v45  ;;  %v1213_v61 = vsub.f32 %v3969_v1, %v4000_v39 }
  0x9d   :  { %5261 = vst [vmem:[#allocation35_spill] sm:$0xff] %v3986_v45  ;;  %1004 = vmatpush.msra.mxu0 %v5266_v14  ;;  %1041 = vmatpush.msra.mxu1 %v3342_v24  ;;  %v4023_v14 = vsub.f32 %v1084_v26, %v3988_v63  ;;  %v1081_v24 = vld [vmem:[%s5014_s3] sm:$0xff]  ;;  %v4037_v26 = vand.u32 4294901760, %v4003_v20 }
  0x9e   :  { %5262 = vst [vmem:[#allocation36_spill] sm:$0xff] %v3988_v63  ;;  %1128 = vmatpush.msra.mxu2 %v3863_v59  ;;  %1191 = vmatpush.msra.mxu3 %v3981_v41  ;;  %v4041_v41 = vand.u32 4294901760, %v1207_v17  ;;  %v4046_v10 = vand.u32 4294901760, %v1081_v24 }
  0x9f   :  { %5263 = vst [vmem:[#allocation37_spill] sm:$0xff] %v3997_v27  ;;  %1008 = vmatpush.msra.mxu0 %v3509_v35  ;;  %1043 = vmatpush.msra.mxu1 %v3365_v32  ;;  %v758_v35 = vand.u32 4294901760, %v757_v8  ;;  %v4044_v32 = vsub.f32 %v1083_v11, %v4013_v48  ;;  %v1225_v11 = vsub.f32 %v4003_v20, %v4037_v26 }
  0xa0   :  { %5264 = vst [vmem:[#allocation38_spill] sm:$0xff] %v4000_v39  ;;  %1130 = vmatpush.msra.mxu2 %v3879_v12  ;;  %1197 = vmatpush.msra.mxu3 %v3997_v27  ;;  %v1219_v27 = vsub.f32 %v3986_v45, %v4020_v7  ;;  %v4053_v39 = vand.u32 4294901760, %v4023_v14 }
  0xa1   :  { %5265 = vst [vmem:[#allocation39_spill] sm:$0xff] %v4003_v20  ;;  %1012 = vmatpush.msra.mxu0 %v3523_v50  ;;  %1045 = vmatpush.msra.mxu1 %v3370_v34  ;;  %v4058_v34 = vsub.f32 %v1082_v36, %v4030_v40  ;;  %v4062_v50 = vand.u32 4294901760, %v1213_v61  ;;  %v4068_v17 = vand.u32 4294901760, %v4044_v32  ;;  %v4085_v8 = vand.u32 4294901760, %v1225_v11  ;;  %v1112_v61 = vld [vmem:[%s5014_s3 + $0xf8] sm:$0xff] }
  0xa2   :  { %5267 = vst [vmem:[#allocation13_spill] sm:$0xff] %v4013_v48  ;;  %1132 = vmatpush.msra.mxu2 %v3900_v3  ;;  %1203 = vmatpush.msra.mxu3 %v4017_v23  ;;  %v1231_v36 = vsub.f32 %v4023_v14, %v4053_v39  ;;  %v4160_v11 = vand.u32 4294901760, %v1112_v61 }
  0xa3   :  { %5268 = vst [vmem:[#allocation40_spill] sm:$0xff] %v4017_v23  ;;  %914 = vmatmul.f32.vlgmr.msrb.gmra.mxu2 %v3938_v5  ;;  %1016 = vmatpush.msra.mxu0 %v3537_v62  ;;  %v4071_v62 = vsub.f32 %v1081_v24, %v4046_v10  ;;  %v4081_v5 = vand.u32 4294901760, %v4058_v34 }
  0xa4   :  { %5269 = vst [vmem:[#allocation41_spill] sm:$0xff] %v4020_v7  ;;  %1047 = vmatpush.msra.mxu1 %v3400_v44  ;;  %1134 = vmatpush.msra.mxu2 %v3933_v19  ;;  %v4074_v44 = vand.u32 4294901760, %v1219_v27 }
  0xa5   :  { %5270 = vst [vmem:[#allocation42_spill] sm:$0xff] %v4023_v14  ;;  %1209 = vmatpush.msra.mxu3 %v4041_v41  ;;  %759 = vmatmul.f32.vlgmr.msrb.gmra.mxu0 %v758_v35  ;;  %v1243_v27 = vsub.f32 %v4058_v34, %v4081_v5 }
  0xa6   :  { %5271 = vst [vmem:[#allocation43_spill] sm:$0xff] %v4030_v40  ;;  %953 = vmatmul.f32.vlgmr.msrb.gmra.mxu3 %v756_v57  ;;  %1020 = vmatpush.msra.mxu0 %v3548_v25  ;;  %v1237_v25 = vsub.f32 %v4044_v32, %v4068_v17  ;;  %v4096_v57 = vand.u32 4294901760, %v1231_v36  ;;  %v1111_v36 = vld [vmem:[%s5014_s3 + $0xf0] sm:$0xff] }
  0xa7   :  { %5272 = vst [vmem:[#allocation44_spill] sm:$0xff] %v4037_v26  ;;  %1049 = vmatpush.msra.mxu1 %v3410_v47  ;;  %1136 = vmatpush.msra.mxu2 %v3955_v33  ;;  %v4092_v47 = vand.u32 4294901760, %v4071_v62 }
  0xa8   :  { %5273 = vst [vmem:[#allocation45_spill] sm:$0xff] %v4041_v41  ;;  %1215 = vmatpush.msra.mxu3 %v4062_v50  ;;  %860 = vmatmul.f32.vlgmr.msrb.gmra.mxu1 %v3902_v52 }
  0xa9   :  { %5274 = vst [vmem:[#allocation46_spill] sm:$0xff] %v4044_v32  ;;  %1259 = vmatpush.msrb.mxu0 %v3801_v37  ;;  %1051 = vmatpush.msra.mxu1 %v3438_v56  ;;  %v4106_v56 = vand.u32 4294901760, %v1237_v25  ;;  %v1249_v24 = vsub.f32 %v4071_v62, %v4092_v47  ;;  %v1110_v25 = vld [vmem:[%s5014_s3 + $0xe8] sm:$0xff] }
  0xaa   :  { %5275 = vst [vmem:[#allocation47_spill] sm:$0xff] %v4046_v10  ;;  %1138 = vmatpush.msra.mxu2 %v3971_v15  ;;  %1221 = vmatpush.msra.mxu3 %v4074_v44 }
  0xab   :  { %5276 = vst [vmem:[#allocation48_spill] sm:$0xff] %v4053_v39  ;;  %1262 = vmatpush.msrb.mxu0 %v3813_v43  ;;  %1053 = vmatpush.msra.mxu1 %v3451_v60  ;;  %v4114_v60 = vand.u32 4294901760, %v1243_v27  ;;  %v1097_v43 = vld [vmem:[%s5014_s3 + $0x80] sm:$0xff] }
  0xac   :  { %5277 = vst [vmem:[#allocation49_spill] sm:$0xff] %v4058_v34  ;;  %1140 = vmatpush.msra.mxu2 %v3988_v63  ;;  %1227 = vmatpush.msra.mxu3 %v4085_v8 }
  0xad   :  { %5278 = vst [vmem:[#allocation50_spill] sm:$0xff] %v4062_v50  ;;  %1265 = vmatpush.msrb.mxu0 %v3828_v54  ;;  %1055 = vmatpush.msra.mxu1 %v3470_v2  ;;  %v4120_v2 = vand.u32 4294901760, %v1249_v24  ;;  %v4176_v24 = vand.u32 4294901760, %v1111_v36 }
  0xae   :  { %5279 = vst [vmem:[#allocation51_spill] sm:$0xff] %v4068_v17  ;;  %1142 = vmatpush.msra.mxu2 %v4013_v48  ;;  %1233 = vmatpush.msra.mxu3 %v4096_v57 }
  0xaf   :  { %5280 = vst [vmem:[#allocation52_spill] sm:$0xff] %v4071_v62  ;;  %1022 = vmatmul.f32.vlgmr.msra.gmra.mxu0 %v3902_v52  ;;  %1057 = vmatpush.msra.mxu1 %v3486_v13  ;;  %v4141_v13 = vld [vmem:[%s5012_s1] sm:$0xff] }
  0xb0   :  { %5281 = vst [vmem:[#allocation53_spill] sm:$0xff] %v4074_v44  ;;  %1268 = vmatpush.msrb.mxu0 %v3843_v29  ;;  %1144 = vmatpush.msra.mxu2 %v4030_v40  ;;  %v1102_v29 = vld [vmem:[%s5014_s3 + $0xa8] sm:$0xff] }
  0xb1   :  { %5282 = vst [vmem:[#allocation54_spill] sm:$0xff] %v4081_v5  ;;  %1239 = vmatpush.msra.mxu3 %v4106_v56  ;;  %1059 = vmatmul.f32.vlgmr.msra.gmra.mxu1 %v3902_v52  ;;  %v3210_v52 = vld [vmem:[%s5012_s1 + $0x10] sm:$0xff] }
  0xb2   :  { %5283 = vst [vmem:[#allocation55_spill] sm:$0xff] %v4085_v8  ;;  %1271 = vmatpush.msrb.mxu0 %v3861_v0  ;;  %1312 = vmatpush.msrb.mxu1 %v3782_v18  ;;  %v1113_v35 = vmul.f32 %v3210_v52, %v4141_v13  ;;  %v1109_v52 = vld [vmem:[%s5014_s3 + $0xe0] sm:$0xff]  ;;  %v1103_v0 = vld [vmem:[%s5014_s3 + $0xb0] sm:$0xff] }
  0xb3   :  { %5284 = vst [vmem:[#allocation56_spill] sm:$0xff] %v4092_v47  ;;  %1146 = vmatpush.msra.mxu2 %v4046_v10  ;;  %1245 = vmatpush.msra.mxu3 %v4114_v60 }
  0xb4   :  { %5285 = vst [vmem:[#allocation57_spill] sm:$0xff] %v4096_v57  ;;  %1274 = vmatpush.msrb.mxu0 %v3877_v58  ;;  %1314 = vmatpush.msrb.mxu1 %v3791_v28  ;;  %v4172_v27 = vand.u32 4294901760, %v1113_v35  ;;  %v4324_v57 = vand.u32 4294901760, %v1102_v29 }
  0xb5   :  { %5286 = vst [vmem:[#allocation58_spill] sm:$0xff] %v4106_v56  ;;  %1353 = vmatpush.msrb.mxu2 %v3825_v21  ;;  %1251 = vmatpush.msra.mxu3 %v4120_v2 }
  0xb6   :  { %5287 = vst [vmem:[#allocation59_spill] sm:$0xff] %v4114_v60  ;;  %1277 = vmatpush.msrb.mxu0 %v3896_v53  ;;  %1316 = vmatpush.msrb.mxu1 %v3803_v38 }
  0xb7   :  { %5288 = vst [vmem:[#allocation60_spill] sm:$0xff] %v4120_v2  ;;  %1357 = vmatpush.msrb.mxu2 %v3840_v22  ;;  %1420 = vmatpush.msrb.mxu3 %v3782_v18 }
  0xb8   :  { %1280 = vmatpush.msrb.mxu0 %v3917_v4  ;;  %1318 = vmatpush.msrb.mxu1 %v3815_v46  ;;  %5289 = vst [vmem:[#allocation61_spill] sm:$0xff] %v4141_v13 }
  0xb9   :  { %1361 = vmatpush.msrb.mxu2 %v3858_v55  ;;  %1422 = vmatpush.msrb.mxu3 %v3791_v28 }
  0xba   :  { %1283 = vmatpush.msrb.mxu0 %v3941_v42  ;;  %1320 = vmatpush.msrb.mxu1 %v3830_v6 }
  0xbb   :  { %1365 = vmatpush.msrb.mxu2 %v3874_v51  ;;  %1424 = vmatpush.msrb.mxu3 %v3803_v38 }
  0xbc   :  { %1286 = vmatpush.msrb.mxu0 %v3969_v1  ;;  %1322 = vmatpush.msrb.mxu1 %v3845_v31  ;;  %v4203_v1 = vsub.f32 %v1111_v36, %v4176_v24 }
  0xbd   :  { %1369 = vmatpush.msrb.mxu2 %v3893_v30  ;;  %1426 = vmatpush.msrb.mxu3 %v3815_v46  ;;  %v4198_v30 = vsub.f32 %v1113_v35, %v4172_v27  ;;  %v1107_v35 = vld [vmem:[%s5014_s3 + $0xd0] sm:$0xff] }
  0xbe   :  { %1289 = vmatpush.msrb.mxu0 %v3986_v45  ;;  %1324 = vmatpush.msrb.mxu1 %v3863_v59  ;;  %v1108_v45 = vld [vmem:[%s5014_s3 + $0xd8] sm:$0xff]  ;;  %5292 = vst [vmem:[#allocation63_spill] sm:$0xff] %v4203_v1 }
  0xbf   :  { %1373 = vmatpush.msrb.mxu2 %v3914_v16  ;;  %1428 = vmatpush.msrb.mxu3 %v3830_v6  ;;  %v4184_v16 = vsub.f32 %v1112_v61, %v4160_v11  ;;  %v5291_v61 = vld [vmem:[#allocation33_spill] sm:$0xff]  ;;  %v4207_v51 = vand.u32 4294901760, %v1108_v45 }
  0xc0   :  { %1292 = vmatpush.msrb.mxu0 %v4003_v20  ;;  %1326 = vmatpush.msrb.mxu1 %v3879_v12  ;;  %v76_v20 = vpop.f32.mrf.mxu0 }
  0xc1   :  { %1377 = vmatpush.msrb.mxu2 %v3931_v49  ;;  %1430 = vmatpush.msrb.mxu3 %v3845_v31  ;;  %5290 = vst [vmem:[#allocation62_spill] sm:$0xff] %v4184_v16  ;;  %v4188_v49 = vand.u32 4294901760, %v1110_v25  ;;  %v4210_v42 = vand.u32 4294901760, %v4184_v16 }
  0xc2   :  { %1295 = vmatpush.msrb.mxu0 %v4023_v14  ;;  %1328 = vmatpush.msrb.mxu1 %v3900_v3  ;;  %v4195_v14 = vand.u32 4294901760, %v1109_v52 }
  0xc3   :  { %1381 = vmatpush.msrb.mxu2 %v3953_v9  ;;  %1432 = vmatpush.msrb.mxu3 %v3863_v59  ;;  %v177_v9 = vpop.f32.mrf.mxu1  ;;  %5293 = vst [vmem:[#allocation64_spill] sm:$0xff] %v4210_v42  ;;  %v4218_v55 = vsub.f32 %v1110_v25, %v4188_v49  ;;  %v4231_v25 = vand.u32 4294901760, %v1107_v35 }
  0xc4   :  { %1298 = vmatpush.msrb.mxu0 %v4044_v32  ;;  %1330 = vmatpush.msrb.mxu1 %v3933_v19  ;;  %v231_v13 = vpop.f32.mrf.mxu2  ;;  %v178_v32 = vadd.f32 %v177_v9, %v76_v20  ;;  %v270_v36 = vpop.f32.mrf.mxu3  ;;  %v4227_v4 = vsub.f32 %v1109_v52, %v4195_v14  ;;  %v1105_v52 = vld [vmem:[%s5014_s3 + $0xc0] sm:$0xff]  ;;  %v4244_v20 = vsub.f32 %v1108_v45, %v4207_v51 }
  0xc5   :  { %1385 = vmatpush.msrb.mxu2 %v5291_v61  ;;  %1434 = vmatpush.msrb.mxu3 %v3879_v12  ;;  %v5294_v61 = vld [vmem:[#allocation38_spill] sm:$0xff]  ;;  %5295 = vst [vmem:[#allocation65_spill] sm:$0xff] %v4218_v55  ;;  %v4268_v21 = vand.u32 4294901760, %v1105_v52 }
  0xc6   :  { %1301 = vmatpush.msrb.mxu0 %v4058_v34  ;;  %1332 = vmatpush.msrb.mxu1 %v3955_v33  ;;  %v232_v9 = vadd.f32 %v231_v13, %v178_v32  ;;  %v1106_v34 = vld [vmem:[%s5014_s3 + $0xc8] sm:$0xff]  ;;  %5296 = vst [vmem:[#allocation66_spill] sm:$0xff] %v4227_v4  ;;  %v1500_v32 = vsub.f32 %v4184_v16, %v4210_v42  ;;  %v4259_v45 = vand.u32 4294901760, %v4227_v4 }
  0xc7   :  { %1389 = vmatpush.msrb.mxu2 %v5294_v61  ;;  %1436 = vmatpush.msrb.mxu3 %v3900_v3  ;;  %5298 = vst [vmem:[#allocation68_spill] sm:$0xff] %v4244_v20  ;;  %v4251_v61 = vand.u32 4294901760, %v4218_v55 }
  0xc8   :  { %1304 = vmatpush.msrb.mxu0 %v4071_v62  ;;  %1334 = vmatpush.msrb.mxu1 %v3971_v15  ;;  %v4234_v62 = vand.u32 4294901760, %v4203_v1  ;;  %v271_v13 = vadd.f32 %v270_v36, %v232_v9  ;;  %v5300_v36 = vand.u32 4294901760, %v4198_v30  ;;  %v4275_v58 = vand.u32 4294901760, %v1500_v32 }
  0xc9   :  { %1393 = vmatpush.msrb.mxu2 %v4020_v7  ;;  %1438 = vmatpush.msrb.mxu3 %v3933_v19  ;;  %v4248_v7 = vand.u32 4294901760, %v1106_v34  ;;  %5299 = vst [vmem:[#allocation69_spill] sm:$0xff] %v4251_v61 }
  0xca   :  { %5297 = vst [vmem:[#allocation67_spill] sm:$0xff] %v4234_v62  ;;  %1457 = vmatpush.msra.mxu0 %v4160_v11  ;;  %1336 = vmatpush.msrb.mxu1 %v3988_v63  ;;  %v1150_v9 = vsub.f32 %v4198_v30, %v5300_v36  ;;  %v339_v22 = vpop.f32.mrf.mxu0  ;;  %v1506_v53 = vsub.f32 %v4203_v1, %v4234_v62 }
  0xcb   :  { %1397 = vmatpush.msrb.mxu2 %v4037_v26  ;;  %1440 = vmatpush.msrb.mxu3 %v3955_v33  ;;  %v1104_v26 = vld [vmem:[%s5014_s3 + $0xb8] sm:$0xff]  ;;  %v340_v2 = vadd.f32 %v339_v22, %v271_v13  ;;  %v4271_v36 = vsub.f32 %v1107_v35, %v4231_v25  ;;  %5302 = vst [vmem:[#allocation71_spill] sm:$0xff] %v4275_v58 }
  0xcc   :  { %1459 = vmatpush.msra.mxu0 %v4176_v24  ;;  %1338 = vmatpush.msrb.mxu1 %v4013_v48  ;;  %v376_v60 = vpop.f32.mrf.mxu1  ;;  %v1512_v22 = vsub.f32 %v4218_v55, %v4251_v61  ;;  %v4289_v13 = vand.u32 4294901760, %v1104_v26  ;;  %v4292_v32 = vsub.f32 %v1106_v34, %v4248_v7  ;;  %v1151_v56 = vand.u32 4294901760, %v1150_v9 }
  0xcd   :  { %1401 = vmatpush.msrb.mxu2 %v4053_v39  ;;  %1442 = vmatpush.msrb.mxu3 %v3971_v15  ;;  %5301 = vst [vmem:[#allocation70_spill] sm:$0xff] %v4271_v36  ;;  %v4278_v39 = vand.u32 4294901760, %v4244_v20  ;;  %v4287_v35 = vadd.f32 %v376_v60, %v340_v2  ;;  %v4303_v60 = vand.u32 4294901760, %v1506_v53  ;;  %v4305_v34 = vand.u32 4294901760, %v1103_v0  ;;  %v1101_v53 = vld [vmem:[%s5014_s3 + $0xa0] sm:$0xff] }
  0xce   :  { %1461 = vmatpush.msra.mxu0 %v4188_v49  ;;  %1340 = vmatpush.msrb.mxu1 %v4030_v40  ;;  %v4308_v2 = vand.u32 4294901760, %v4271_v36  ;;  %v4311_v9 = vsub.f32 %v1105_v52, %v4268_v21  ;;  %v4327_v52 = vand.u32 4294901760, %v4292_v32 }
  0xcf   :  { %1405 = vmatpush.msrb.mxu2 %v4068_v17  ;;  %1444 = vmatpush.msrb.mxu3 %v3988_v63  ;;  %5303 = vst [vmem:[#allocation72_spill] sm:$0xff] %v4287_v35  ;;  %v1518_v17 = vsub.f32 %v4227_v4, %v4259_v45  ;;  %v1524_v35 = vsub.f32 %v4244_v20, %v4278_v39 }
  0xd0   :  { %1463 = vmatpush.msra.mxu0 %v4195_v14  ;;  %1342 = vmatpush.msrb.mxu1 %v4046_v10  ;;  %5304 = vst [vmem:[#allocation73_spill] sm:$0xff] %v4303_v60 }
  0xd1   :  { %1409 = vmatpush.msrb.mxu2 %v4081_v5  ;;  %1446 = vmatpush.msrb.mxu3 %v4013_v48  ;;  %5305 = vst [vmem:[#allocation74_spill] sm:$0xff] %v4311_v9  ;;  %v4322_v5 = vand.u32 4294901760, %v1512_v22  ;;  %v4333_v48 = vand.u32 4294901760, %v1518_v17  ;;  %v1530_v22 = vsub.f32 %v4271_v36, %v4308_v2  ;;  %v4352_v17 = vand.u32 4294901760, %v1524_v35 }
  0xd2   :  { %1465 = vmatpush.msra.mxu0 %v4207_v51  ;;  %1502 = vmatpush.msra.mxu1 %v4275_v58  ;;  %v4330_v58 = vsub.f32 %v1104_v26, %v4289_v13  ;;  %v4345_v26 = vand.u32 4294901760, %v4311_v9 }
  0xd3   :  { %1413 = vmatpush.msrb.mxu2 %v4092_v47  ;;  %1448 = vmatpush.msrb.mxu3 %v4030_v40  ;;  %5306 = vst [vmem:[#allocation75_spill] sm:$0xff] %v4322_v5  ;;  %v1100_v47 = vld [vmem:[%s5014_s3 + $0x98] sm:$0xff]  ;;  %v4342_v40 = vand.u32 4294901760, %v1101_v53  ;;  %v4373_v35 = vand.u32 4294901760, %v1530_v22  ;;  %v1098_v22 = vld [vmem:[%s5014_s3 + $0x88] sm:$0xff] }
  0xd4   :  { %5307 = vst [vmem:[#allocation76_spill] sm:$0xff] %v4330_v58  ;;  %1152 = vmatmul.f32.vlgmr.msra.gmra.mxu2 %v1151_v56  ;;  %1467 = vmatpush.msra.mxu0 %v4231_v25  ;;  %v4348_v56 = vsub.f32 %v1103_v0, %v4305_v34  ;;  %v4361_v54 = vand.u32 4294901760, %v4330_v58  ;;  %v1099_v0 = vld [vmem:[%s5014_s3 + $0x90] sm:$0xff]  ;;  %v4413_v44 = vand.u32 4294901760, %v1098_v22 }
  0xd5   :  { %5308 = vst [vmem:[#allocation77_spill] sm:$0xff] %v4333_v48  ;;  %1508 = vmatpush.msra.mxu1 %v4303_v60  ;;  %1600 = vmatpush.msra.mxu2 %v4184_v16  ;;  %v1536_v16 = vsub.f32 %v4292_v32, %v4327_v52  ;;  %v4358_v60 = vand.u32 4294901760, %v1100_v47  ;;  %v4381_v63 = vsub.f32 %v1101_v53, %v4342_v40 }
  0xd6   :  { %5309 = vst [vmem:[#allocation78_spill] sm:$0xff] %v4345_v26  ;;  %1450 = vmatpush.msrb.mxu3 %v4046_v10  ;;  %1469 = vmatpush.msra.mxu0 %v4248_v7  ;;  %v4367_v10 = vsub.f32 %v1102_v29, %v4324_v57  ;;  %v4378_v8 = vand.u32 4294901760, %v4348_v56  ;;  %v4385_v29 = vand.u32 4294901760, %v1099_v0  ;;  %v1548_v53 = vsub.f32 %v4330_v58, %v4361_v54 }
  0xd7   :  { %5310 = vst [vmem:[#allocation79_spill] sm:$0xff] %v4348_v56  ;;  %1253 = vmatmul.f32.vlgmr.msra.gmra.mxu3 %v4172_v27  ;;  %1514 = vmatpush.msra.mxu1 %v4322_v5  ;;  %v1542_v5 = vsub.f32 %v4311_v9, %v4345_v26 }
  0xd8   :  { %5311 = vst [vmem:[#allocation80_spill] sm:$0xff] %v4352_v17  ;;  %1603 = vmatpush.msra.mxu2 %v4203_v1  ;;  %1653 = vmatpush.msra.mxu3 %v4160_v11  ;;  %v4397_v1 = vand.u32 4294901760, %v4367_v10  ;;  %v4433_v15 = vand.u32 4294901760, %v1548_v53 }
  0xd9   :  { %5312 = vst [vmem:[#allocation81_spill] sm:$0xff] %v4361_v54  ;;  %1471 = vmatpush.msra.mxu0 %v4268_v21  ;;  %1520 = vmatpush.msra.mxu1 %v4333_v48  ;;  %v4392_v48 = vand.u32 4294901760, %v1536_v16  ;;  %v4409_v16 = vand.u32 4294901760, %v1542_v5  ;;  %v4426_v5 = vld [vmem:[%s5012_s1 + $0x8] sm:$0xff] }
  0xda   :  { %5313 = vst [vmem:[#allocation82_spill] sm:$0xff] %v4367_v10  ;;  %1606 = vmatpush.msra.mxu2 %v4218_v55  ;;  %1655 = vmatpush.msra.mxu3 %v4176_v24  ;;  %v4400_v55 = vsub.f32 %v1100_v47, %v4358_v60  ;;  %v4416_v47 = vand.u32 4294901760, %v4381_v63 }
  0xdb   :  { %5314 = vst [vmem:[#allocation83_spill] sm:$0xff] %v4373_v35  ;;  %1473 = vmatpush.msra.mxu0 %v4289_v13  ;;  %1526 = vmatpush.msra.mxu1 %v4352_v17  ;;  %v1554_v17 = vsub.f32 %v4348_v56, %v4378_v8 }
  0xdc   :  { %5315 = vst [vmem:[#allocation84_spill] sm:$0xff] %v4378_v8  ;;  %1609 = vmatpush.msra.mxu2 %v4227_v4  ;;  %1657 = vmatpush.msra.mxu3 %v4188_v49  ;;  %v4421_v4 = vsub.f32 %v1099_v0, %v4385_v29  ;;  %v4437_v0 = vand.u32 4294901760, %v1097_v43  ;;  %v4440_v37 = vand.u32 4294901760, %v4400_v55  ;;  %v1566_v53 = vsub.f32 %v4381_v63, %v4416_v47 }
  0xdd   :  { %5316 = vst [vmem:[#allocation85_spill] sm:$0xff] %v4381_v63  ;;  %1475 = vmatpush.msra.mxu0 %v4305_v34  ;;  %1532 = vmatpush.msra.mxu1 %v4373_v35  ;;  %v3211_v35 = vld [vmem:[%s5012_s1 + $0x18] sm:$0xff]  ;;  %v4446_v50 = vand.u32 4294901760, %v1554_v17 }
  0xde   :  { %5317 = vst [vmem:[#allocation86_spill] sm:$0xff] %v4392_v48  ;;  %1612 = vmatpush.msra.mxu2 %v4244_v20  ;;  %1659 = vmatpush.msra.mxu3 %v4195_v14  ;;  %v1560_v20 = vsub.f32 %v4367_v10, %v4397_v1  ;;  %v1114_v33 = vmul.f32 %v3211_v35, %v4426_v5  ;;  %v4472_v35 = vand.u32 4294901760, %v1566_v53 }
  0xdf   :  { %5318 = vst [vmem:[#allocation87_spill] sm:$0xff] %v4397_v1  ;;  %1477 = vmatpush.msra.mxu0 %v4324_v57  ;;  %1538 = vmatpush.msra.mxu1 %v4392_v48  ;;  %v4451_v48 = vsub.f32 %v1098_v22, %v4413_v44  ;;  %v4466_v22 = vsub.f32 %v1097_v43, %v4437_v0 }
  0xe0   :  { %5319 = vst [vmem:[#allocation88_spill] sm:$0xff] %v4409_v16  ;;  %1615 = vmatpush.msra.mxu2 %v4271_v36  ;;  %1661 = vmatpush.msra.mxu3 %v4207_v51  ;;  %v4457_v36 = vand.u32 4294901760, %v4421_v4  ;;  %v4461_v17 = vand.u32 4294901760, %v1560_v20  ;;  %v4477_v20 = vand.u32 4294901760, %v1114_v33 }
  0xe1   :  { %5320 = vst [vmem:[#allocation89_spill] sm:$0xff] %v4416_v47  ;;  %1479 = vmatpush.msra.mxu0 %v4342_v40  ;;  %1544 = vmatpush.msra.mxu1 %v4409_v16  ;;  %v1572_v16 = vsub.f32 %v4400_v55, %v4440_v37  ;;  %v4488_v53 = vand.u32 4294901760, %v4466_v22 }
  0xe2   :  { %5321 = vst [vmem:[#allocation90_spill] sm:$0xff] %v4421_v4  ;;  %1618 = vmatpush.msra.mxu2 %v4292_v32  ;;  %1663 = vmatpush.msra.mxu3 %v4231_v25  ;;  %v1578_v43 = vsub.f32 %v4421_v4, %v4457_v36 }
  0xe3   :  { %5322 = vst [vmem:[#allocation91_spill] sm:$0xff] %v4433_v15  ;;  %1481 = vmatpush.msra.mxu0 %v4358_v60  ;;  %1550 = vmatpush.msra.mxu1 %v4433_v15  ;;  %v4475_v15 = vand.u32 4294901760, %v4451_v48 }
  0xe4   :  { %5323 = vst [vmem:[#allocation92_spill] sm:$0xff] %v4440_v37  ;;  %1621 = vmatpush.msra.mxu2 %v4311_v9  ;;  %1665 = vmatpush.msra.mxu3 %v4248_v7  ;;  %v4485_v9 = vand.u32 4294901760, %v1572_v16  ;;  %v4499_v16 = vand.u32 4294901760, %v1578_v43 }
  0xe5   :  { %5324 = vst [vmem:[#allocation93_spill] sm:$0xff] %v4446_v50  ;;  %1483 = vmatpush.msra.mxu0 %v4385_v29  ;;  %1556 = vmatpush.msra.mxu1 %v4446_v50  ;;  %v1489_v50 = vsub.f32 %v1114_v33, %v4477_v20 }
  0xe6   :  { %5325 = vst [vmem:[#allocation94_spill] sm:$0xff] %v4457_v36  ;;  %1624 = vmatpush.msra.mxu2 %v4330_v58  ;;  %1667 = vmatpush.msra.mxu3 %v4268_v21  ;;  %v1584_v58 = vsub.f32 %v4451_v48, %v4475_v15 }
  0xe7   :  { %5326 = vst [vmem:[#allocation95_spill] sm:$0xff] %v4472_v35  ;;  %1485 = vmatpush.msra.mxu0 %v4413_v44  ;;  %1562 = vmatpush.msra.mxu1 %v4461_v17 }
  0xe8   :  { %5327 = vst [vmem:[#allocation96_spill] sm:$0xff] %v4475_v15  ;;  %1627 = vmatpush.msra.mxu2 %v4348_v56  ;;  %1669 = vmatpush.msra.mxu3 %v4289_v13  ;;  %v1590_v56 = vsub.f32 %v4466_v22, %v4488_v53  ;;  %v4509_v33 = vand.u32 4294901760, %v1584_v58 }
  0xe9   :  { %5328 = vst [vmem:[#allocation97_spill] sm:$0xff] %v4485_v9  ;;  %1487 = vmatpush.msra.mxu0 %v4437_v0  ;;  %1568 = vmatpush.msra.mxu1 %v4472_v35 }
  0xea   :  { %5329 = vst [vmem:[#allocation98_spill] sm:$0xff] %v4488_v53  ;;  %1630 = vmatpush.msra.mxu2 %v4367_v10  ;;  %1671 = vmatpush.msra.mxu3 %v4305_v34  ;;  %v1490_v10 = vand.u32 4294901760, %v1489_v50  ;;  %v4515_v43 = vand.u32 4294901760, %v1590_v56 }
  0xeb   :  { %1307 = vmatmul.f32.vlgmr.msrb.gmra.mxu0 %v4198_v30  ;;  %1574 = vmatpush.msra.mxu1 %v4485_v9  ;;  %5330 = vst [vmem:[#allocation99_spill] sm:$0xff] %v4509_v33 }
  0xec   :  { %1694 = vmatpush.msrb.mxu0 %v4210_v42  ;;  %1633 = vmatpush.msra.mxu2 %v4381_v63  ;;  %v1491_v58 = vsub.f32 %v1489_v50, %v1490_v10 }
  0xed   :  { %1673 = vmatpush.msra.mxu3 %v4324_v57  ;;  %1415 = vmatmul.f32.vlgmr.msrb.gmra.mxu2 %v4172_v27 }
  0xee   :  { %1698 = vmatpush.msrb.mxu0 %v4234_v62  ;;  %1580 = vmatpush.msra.mxu1 %v4499_v16  ;;  %v5331_v62 = vand.u32 4294901760, %v4198_v30  ;;  %v5332_v30 = vld [vmem:[#allocation5_spill] sm:$0xff] }
  0xef   :  { %1636 = vmatpush.msra.mxu2 %v4400_v55  ;;  %1675 = vmatpush.msra.mxu3 %v4342_v40 }
  0xf0   :  { %1452 = vmatmul.f32.vlgmr.msrb.gmra.mxu3 %v4172_v27  ;;  %1702 = vmatpush.msrb.mxu0 %v4251_v61  ;;  %v418_v27 = vpop.f32.mrf.mxu2 }
  0xf1   :  { %1586 = vmatpush.msra.mxu1 %v4509_v33  ;;  %1639 = vmatpush.msra.mxu2 %v4421_v4  ;;  %v1492_v4 = vand.u32 4294901760, %v1491_v58 }
  0xf2   :  { %1677 = vmatpush.msra.mxu3 %v4358_v60  ;;  %1346 = vmatmul.f32.vlgmr.msrb.gmra.mxu1 %v5331_v62  ;;  %v519_v56 = vpop.f32.mrf.mxu3 }
  0xf3   :  { %1706 = vmatpush.msrb.mxu0 %v4259_v45  ;;  %1592 = vmatpush.msra.mxu1 %v4515_v43  ;;  %v520_v33 = vadd.f32 %v519_v56, %v418_v27  ;;  %v5336_v27 = vld [vmem:[#allocation30_spill] sm:$0xff] }
  0xf4   :  { %1642 = vmatpush.msra.mxu2 %v4451_v48  ;;  %1679 = vmatpush.msra.mxu3 %v4385_v29  ;;  %v5337_v56 = vld [vmem:[#allocation34_spill] sm:$0xff] }
  0xf5   :  { %1710 = vmatpush.msrb.mxu0 %v4278_v39  ;;  %1761 = vmatpush.msrb.mxu1 %v4160_v11 }
  0xf6   :  { %1645 = vmatpush.msra.mxu2 %v4466_v22  ;;  %1681 = vmatpush.msra.mxu3 %v4413_v44 }
  0xf7   :  { %1648 = vmatmul.f32.vlgmr.msra.gmra.mxu2 %v1489_v50  ;;  %1714 = vmatpush.msrb.mxu0 %v4308_v2  ;;  %v5333_v50 = vld [vmem:[#allocation6_spill] sm:$0xff] }
  0xf8   :  { %1763 = vmatpush.msrb.mxu1 %v4176_v24  ;;  %1800 = vmatpush.msrb.mxu2 %v3782_v18 }
  0xf9   :  { %1683 = vmatpush.msra.mxu3 %v4437_v0  ;;  %1493 = vmatmul.f32.vlgmr.msra.gmra.mxu0 %v1492_v4  ;;  %v5334_v4 = vld [vmem:[#allocation25_spill] sm:$0xff] }
  0xfa   :  { %1687 = vmatmul.f32.vlgmr.msra.gmra.mxu3 %v1490_v10  ;;  %1718 = vmatpush.msrb.mxu0 %v4327_v52  ;;  %v5335_v10 = vld [vmem:[#allocation27_spill] sm:$0xff] }
  0xfb   :  { %1765 = vmatpush.msrb.mxu1 %v4188_v49  ;;  %1802 = vmatpush.msrb.mxu2 %v3791_v28 }
  0xfc   :  { %1845 = vmatpush.msrb.mxu3 %v5332_v30  ;;  %1594 = vmatmul.f32.vlgmr.msra.gmra.mxu1 %v4477_v20 }
  0xfd   :  { %1722 = vmatpush.msrb.mxu0 %v4345_v26  ;;  %1767 = vmatpush.msrb.mxu1 %v4195_v14 }
  0xfe   :  { %1804 = vmatpush.msrb.mxu2 %v3803_v38  ;;  %1851 = vmatpush.msrb.mxu3 %v5333_v50 }
  0xff   :  { %1726 = vmatpush.msrb.mxu0 %v4361_v54  ;;  %1769 = vmatpush.msrb.mxu1 %v4207_v51 }
 0x100   :  { %1806 = vmatpush.msrb.mxu2 %v3815_v46  ;;  %1857 = vmatpush.msrb.mxu3 %v5334_v4 }
 0x101   :  { %1730 = vmatpush.msrb.mxu0 %v4378_v8  ;;  %1771 = vmatpush.msrb.mxu1 %v4231_v25 }
 0x102   :  { %1808 = vmatpush.msrb.mxu2 %v3830_v6  ;;  %1863 = vmatpush.msrb.mxu3 %v5335_v10  ;;  %v573_v62 = vpop.f32.mrf.mxu0  ;;  %v5359_v10 = vld [vmem:[#allocation22_spill] sm:$0xff] }
 0x103   :  { %1734 = vmatpush.msrb.mxu0 %v4397_v1  ;;  %1773 = vmatpush.msrb.mxu1 %v4248_v7  ;;  %v574_v58 = vadd.f32 %v573_v62, %v520_v33  ;;  %v5338_v1 = vld [vmem:[#allocation37_spill] sm:$0xff] }
 0x104   :  { %1810 = vmatpush.msrb.mxu2 %v3845_v31  ;;  %1869 = vmatpush.msrb.mxu3 %v5336_v27  ;;  %v5356_v27 = vld [vmem:[#allocation20_spill] sm:$0xff] }
 0x105   :  { %1738 = vmatpush.msrb.mxu0 %v4416_v47  ;;  %1775 = vmatpush.msrb.mxu1 %v4268_v21 }
 0x106   :  { %1812 = vmatpush.msrb.mxu2 %v3863_v59  ;;  %1875 = vmatpush.msrb.mxu3 %v5337_v56  ;;  %v5340_v56 = vld [vmem:[#allocation50_spill] sm:$0xff] }
 0x107   :  { %1742 = vmatpush.msrb.mxu0 %v4440_v37  ;;  %1777 = vmatpush.msrb.mxu1 %v4289_v13  ;;  %v5339_v37 = vld [vmem:[#allocation29_spill] sm:$0xff] }
 0x108   :  { %1814 = vmatpush.msrb.mxu2 %v3879_v12  ;;  %1881 = vmatpush.msrb.mxu3 %v5338_v1 }
 0x109   :  { %1746 = vmatpush.msrb.mxu0 %v4457_v36  ;;  %1779 = vmatpush.msrb.mxu1 %v4305_v34  ;;  %v612_v33 = vpop.f32.mrf.mxu1 }
 0x10a   :  { %1816 = vmatpush.msrb.mxu2 %v3900_v3  ;;  %1887 = vmatpush.msrb.mxu3 %v4017_v23  ;;  %v613_v62 = vadd.f32 %v612_v33, %v574_v58  ;;  %v681_v47 = vpop.f32.mrf.mxu2  ;;  %v5341_v33 = vld [vmem:[#allocation8_spill] sm:$0xff]  ;;  %v5352_v23 = vld [vmem:[#allocation58_spill] sm:$0xff] }
 0x10b   :  { %1750 = vmatpush.msrb.mxu0 %v4475_v15  ;;  %1781 = vmatpush.msrb.mxu1 %v4324_v57  ;;  %v5342_v15 = vld [vmem:[#allocation32_spill] sm:$0xff] }
 0x10c   :  { %1818 = vmatpush.msrb.mxu2 %v3933_v19  ;;  %1893 = vmatpush.msrb.mxu3 %v4041_v41  ;;  %v682_v1 = vadd.f32 %v681_v47, %v613_v62  ;;  %v5343_v47 = vld [vmem:[#allocation53_spill] sm:$0xff]  ;;  %v5346_v41 = vld [vmem:[#allocation55_spill] sm:$0xff] }
 0x10d   :  { %1754 = vmatpush.msrb.mxu0 %v4488_v53  ;;  %1783 = vmatpush.msrb.mxu1 %v4342_v40  ;;  %v718_v36 = vpop.f32.mrf.mxu3  ;;  %v5344_v62 = vld [vmem:[#allocation9_spill] sm:$0xff]  ;;  %v5345_v53 = vld [vmem:[#allocation36_spill] sm:$0xff] }
 0x10e   :  { %1820 = vmatpush.msrb.mxu2 %v5339_v37  ;;  %1899 = vmatpush.msrb.mxu3 %v5340_v56  ;;  %v4577_v58 = vadd.f32 %v718_v36, %v682_v1  ;;  %v5347_v1 = vld [vmem:[#allocation14_spill] sm:$0xff]  ;;  %v5348_v36 = vld [vmem:[#allocation13_spill] sm:$0xff] }
 0x10f   :  { %1756 = vmatmul.f32.vlgmr.msrb.gmra.mxu0 %v4477_v20  ;;  %1785 = vmatpush.msrb.mxu1 %v4358_v60  ;;  %v5349_v56 = vld [vmem:[#allocation57_spill] sm:$0xff] }
 0x110   :  { %1943 = vmatpush.msra.mxu0 %v5341_v33  ;;  %1822 = vmatpush.msrb.mxu2 %v5342_v15  ;;  %v5350_v33 = vld [vmem:[#allocation17_spill] sm:$0xff] }
 0x111   :  { %1905 = vmatpush.msrb.mxu3 %v5343_v47  ;;  %1787 = vmatpush.msrb.mxu1 %v4385_v29  ;;  %v5351_v47 = vld [vmem:[#allocation43_spill] sm:$0xff] }
 0x112   :  { %1946 = vmatpush.msra.mxu0 %v5344_v62  ;;  %1824 = vmatpush.msrb.mxu2 %v5345_v53  ;;  %v5353_v62 = vld [vmem:[#allocation19_spill] sm:$0xff] }
 0x113   :  { %1911 = vmatpush.msrb.mxu3 %v5346_v41  ;;  %1789 = vmatpush.msrb.mxu1 %v4413_v44  ;;  %v5354_v41 = vld [vmem:[#allocation47_spill] sm:$0xff] }
 0x114   :  { %1949 = vmatpush.msra.mxu0 %v5347_v1  ;;  %1826 = vmatpush.msrb.mxu2 %v5348_v36  ;;  %v5355_v1 = vld [vmem:[#allocation59_spill] sm:$0xff] }
 0x115   :  { %1917 = vmatpush.msrb.mxu3 %v5349_v56  ;;  %1791 = vmatpush.msrb.mxu1 %v4437_v0  ;;  %v5357_v56 = vld [vmem:[#allocation12_spill] sm:$0xff] }
 0x116   :  { %1952 = vmatpush.msra.mxu0 %v5350_v33  ;;  %1828 = vmatpush.msrb.mxu2 %v5351_v47  ;;  %v5358_v33 = vld [vmem:[#allocation60_spill] sm:$0xff] }
 0x117   :  { %1923 = vmatpush.msrb.mxu3 %v5352_v23  ;;  %1793 = vmatmul.f32.vlgmr.msrb.gmra.mxu1 %v4477_v20  ;;  %v5360_v20 = vld [vmem:[#allocation16_spill] sm:$0xff]  ;;  %v5367_v23 = vld [vmem:[#allocation21_spill] sm:$0xff] }
 0x118   :  { %1955 = vmatpush.msra.mxu0 %v5353_v62  ;;  %1996 = vmatpush.msra.mxu1 %v3782_v18  ;;  %v5361_v62 = vld [vmem:[#allocation24_spill] sm:$0xff] }
 0x119   :  { %1830 = vmatpush.msrb.mxu2 %v5354_v41  ;;  %1929 = vmatpush.msrb.mxu3 %v5355_v1  ;;  %v5362_v1 = vld [vmem:[#allocation18_spill] sm:$0xff] }
 0x11a   :  { %1958 = vmatpush.msra.mxu0 %v5356_v27  ;;  %1998 = vmatpush.msra.mxu1 %v3791_v28  ;;  %v5363_v27 = vld [vmem:[#allocation7_spill] sm:$0xff] }
 0x11b   :  { %2037 = vmatpush.msra.mxu2 %v5357_v56  ;;  %1935 = vmatpush.msrb.mxu3 %v5358_v33  ;;  %v5364_v33 = vld [vmem:[#allocation15_spill] sm:$0xff] }
 0x11c   :  { %1961 = vmatpush.msra.mxu0 %v5359_v10  ;;  %2000 = vmatpush.msra.mxu1 %v3803_v38  ;;  %v5365_v10 = vld [vmem:[#allocation31_spill] sm:$0xff] }
 0x11d   :  { %2041 = vmatpush.msra.mxu2 %v5360_v20  ;;  %2104 = vmatpush.msra.mxu3 %v3782_v18 }
 0x11e   :  { %1964 = vmatpush.msra.mxu0 %v5361_v62  ;;  %2002 = vmatpush.msra.mxu1 %v3815_v46  ;;  %v5366_v62 = vld [vmem:[#allocation61_spill] sm:$0xff] }
 0x11f   :  { %2045 = vmatpush.msra.mxu2 %v5362_v1  ;;  %2106 = vmatpush.msra.mxu3 %v3791_v28  ;;  %v1797_v56 = vmul.f32 %v5366_v62, %v5366_v62  ;;  %v5368_v1 = vld [vmem:[#allocation35_spill] sm:$0xff] }
 0x120   :  { %1967 = vmatpush.msra.mxu0 %v5363_v27  ;;  %2004 = vmatpush.msra.mxu1 %v3830_v6  ;;  %v5369_v27 = vld [vmem:[#allocation23_spill] sm:$0xff] }
 0x121   :  { %2049 = vmatpush.msra.mxu2 %v5364_v33  ;;  %2108 = vmatpush.msra.mxu3 %v3803_v38  ;;  %v4629_v62 = vand.u32 4294901760, %v1797_v56 }
 0x122   :  { %1970 = vmatpush.msra.mxu0 %v5365_v10  ;;  %2006 = vmatpush.msra.mxu1 %v3845_v31  ;;  %v760_v20 = vpop.f32.mrf.mxu0  ;;  %v5370_v10 = vld [vmem:[#allocation39_spill] sm:$0xff] }
 0x123   :  { %2053 = vmatpush.msra.mxu2 %v5367_v23  ;;  %2110 = vmatpush.msra.mxu3 %v3815_v46  ;;  %v5371_v23 = vld [vmem:[#allocation26_spill] sm:$0xff]  ;;  %v5373_v46 = vld [vmem:[#allocation28_spill] sm:$0xff] }
 0x124   :  { %1973 = vmatpush.msra.mxu0 %v5368_v1  ;;  %2008 = vmatpush.msra.mxu1 %v3863_v59  ;;  %v5372_v1 = vld [vmem:[#allocation42_spill] sm:$0xff] }
 0x125   :  { %2057 = vmatpush.msra.mxu2 %v5369_v27  ;;  %2112 = vmatpush.msra.mxu3 %v3830_v6  ;;  %v861_v33 = vpop.f32.mrf.mxu1  ;;  %v5374_v6 = vld [vmem:[#allocation46_spill] sm:$0xff] }
 0x126   :  { %1976 = vmatpush.msra.mxu0 %v5370_v10  ;;  %2010 = vmatpush.msra.mxu1 %v3879_v12  ;;  %v862_v8 = vadd.f32 %v861_v33, %v760_v20  ;;  %v915_v4 = vpop.f32.mrf.mxu2  ;;  %v4640_v20 = vsub.f32 %v1797_v56, %v4629_v62  ;;  %v5379_v56 = vld [vmem:[#allocation41_spill] sm:$0xff] }
 0x127   :  { %2061 = vmatpush.msra.mxu2 %v5371_v23  ;;  %2114 = vmatpush.msra.mxu3 %v3845_v31  ;;  %v5375_v23 = vld [vmem:[#allocation33_spill] sm:$0xff] }
 0x128   :  { %1979 = vmatpush.msra.mxu0 %v5372_v1  ;;  %2012 = vmatpush.msra.mxu1 %v3900_v3  ;;  %v916_v27 = vadd.f32 %v915_v4, %v862_v8  ;;  %v5376_v1 = vld [vmem:[#allocation49_spill] sm:$0xff]  ;;  %v5377_v4 = vld [vmem:[#allocation38_spill] sm:$0xff] }
 0x129   :  { %2065 = vmatpush.msra.mxu2 %v5373_v46  ;;  %2116 = vmatpush.msra.mxu3 %v3863_v59  ;;  %v954_v10 = vpop.f32.mrf.mxu3  ;;  %v5378_v46 = vld [vmem:[#allocation52_spill] sm:$0xff] }
 0x12a   :  { %1982 = vmatpush.msra.mxu0 %v5374_v6  ;;  %2014 = vmatpush.msra.mxu1 %v3933_v19  ;;  %v955_v33 = vadd.f32 %v954_v10, %v916_v27  ;;  %v5203_v27 = vand.u32 4294901760, %v4640_v20 }
 0x12b   :  { %2069 = vmatpush.msra.mxu2 %v5375_v23  ;;  %2118 = vmatpush.msra.mxu3 %v3879_v12 }
 0x12c   :  { %1985 = vmatpush.msra.mxu0 %v5376_v1  ;;  %2016 = vmatpush.msra.mxu1 %v5339_v37  ;;  %v1023_v8 = vpop.f32.mrf.mxu0 }
 0x12d   :  { %2073 = vmatpush.msra.mxu2 %v5377_v4  ;;  %2120 = vmatpush.msra.mxu3 %v3900_v3  ;;  %v1024_v6 = vadd.f32 %v1023_v8, %v955_v33  ;;  %v5380_v4 = vld [vmem:[#allocation44_spill] sm:$0xff]  ;;  %v1834_v8 = vsub.f32 %v4640_v20, %v5203_v27 }
 0x12e   :  { %1988 = vmatpush.msra.mxu0 %v5378_v46  ;;  %2018 = vmatpush.msra.mxu1 %v5342_v15  ;;  %v1060_v10 = vpop.f32.mrf.mxu1  ;;  %v5385_v27 = vld [vmem:[#allocation56_spill] sm:$0xff] }
 0x12f   :  { %2077 = vmatpush.msra.mxu2 %v5379_v56  ;;  %2122 = vmatpush.msra.mxu3 %v3933_v19  ;;  %v1061_v1 = vadd.f32 %v1060_v10, %v1024_v6  ;;  %v5381_v56 = vld [vmem:[#allocation48_spill] sm:$0xff]  ;;  %v5382_v10 = vld [vmem:[#allocation51_spill] sm:$0xff] }
 0x130   :  { %2141 = vmatpush.msrb.mxu0 %v4160_v11  ;;  %2020 = vmatpush.msra.mxu1 %v5345_v53  ;;  %v5392_v46 = vld [vmem:[#allocation80_spill] sm:$0xff] }
 0x131   :  { %2081 = vmatpush.msra.mxu2 %v5380_v4  ;;  %2124 = vmatpush.msra.mxu3 %v5339_v37  ;;  %v1063_v33 = vmul.f32 %v1061_v1, %v4577_v58  ;;  %v1835_v58 = vand.u32 4294901760, %v1834_v8  ;;  %v5383_v1 = vld [vmem:[#allocation54_spill] sm:$0xff] }
 0x132   :  { %2143 = vmatpush.msrb.mxu0 %v4176_v24  ;;  %2022 = vmatpush.msra.mxu1 %v5348_v36  ;;  %v5387_v4 = vld [vmem:[#allocation62_spill] sm:$0xff] }
 0x133   :  { %2085 = vmatpush.msra.mxu2 %v5381_v56  ;;  %2126 = vmatpush.msra.mxu3 %v5342_v15  ;;  %v1064_v6 = vmax.f32 %v1063_v33, 1e-16  ;;  %v5384_v33 = vld [vmem:[#allocation71_spill] sm:$0xff]  ;;  %v5386_v56 = vld [vmem:[#allocation73_spill] sm:$0xff] }
 0x134   :  { %2145 = vmatpush.msrb.mxu0 %v4188_v49  ;;  %2024 = vmatpush.msra.mxu1 %v5351_v47 }
 0x135   :  { %2089 = vmatpush.msra.mxu2 %v5382_v10  ;;  %2128 = vmatpush.msra.mxu3 %v5345_v53  ;;  %3215 = vrsqrt.f32 %v1064_v6  ;;  %vm1071_vm1 = vweird.f32 %v1064_v6 }
 0x136   :  { %2147 = vmatpush.msrb.mxu0 %v4195_v14  ;;  %2026 = vmatpush.msra.mxu1 %v5354_v41 }
 0x137   :  { %2093 = vmatpush.msra.mxu2 %v5383_v1  ;;  %2130 = vmatpush.msra.mxu3 %v5348_v36  ;;  %v5389_v1 = vld [vmem:[#allocation63_spill] sm:$0xff] }
 0x138   :  { %2149 = vmatpush.msrb.mxu0 %v4207_v51  ;;  %2186 = vmatpush.msrb.mxu1 %v5384_v33  ;;  %v5388_v33 = vld [vmem:[#allocation75_spill] sm:$0xff] }
 0x139   :  { %2097 = vmatpush.msra.mxu2 %v5385_v27  ;;  %2132 = vmatpush.msra.mxu3 %v5351_v47 }
 0x13a   :  { %1836 = vmatmul.f32.vlgmr.msrb.gmra.mxu2 %v1835_v58  ;;  %2151 = vmatpush.msrb.mxu0 %v4231_v25  ;;  %v5390_v58 = vld [vmem:[#allocation77_spill] sm:$0xff] }
 0x13b   :  { %v3216_v10 = vpop.eup %3215  ;;  %2192 = vmatpush.msrb.mxu1 %v5386_v56  ;;  %2284 = vmatpush.msrb.mxu2 %v5387_v4  ;;  %v5391_v4 = vld [vmem:[#allocation65_spill] sm:$0xff] }
 0x13c   :  { %v1066_v8 = vmul.f32 %v3216_v10, %v1064_v6  ;;  %2134 = vmatpush.msra.mxu3 %v5354_v41  ;;  %2153 = vmatpush.msrb.mxu0 %v4248_v7  ;;  %vm1072_vm0 = vweird.f32 %v3216_v10  ;;  %v1798_v6 = vmul.f32 %v4426_v5, %v4426_v5 }
 0x13d   :  { %1937 = vmatmul.f32.vlgmr.msrb.gmra.mxu3 %v4629_v62  ;;  %2198 = vmatpush.msrb.mxu1 %v5388_v33  ;;  %v5393_v33 = vld [vmem:[#allocation66_spill] sm:$0xff]  ;;  %vm1073_vm2 = vmor %vm1071_vm1, %vm1072_vm0 }
 0x13e   :  { %v1067_v27 = vmul.f32 %v3216_v10, %v1066_v8  ;;  %2287 = vmatpush.msrb.mxu2 %v5389_v1  ;;  %2337 = vmatpush.msrb.mxu3 %v4160_v11  ;;  %v5394_v8 = vld [vmem:[#allocation83_spill] sm:$0xff]  ;;  %v4717_v5 = vand.u32 4294901760, %v1798_v6 }
 0x13f   :  { %2155 = vmatpush.msrb.mxu0 %v4268_v21  ;;  %2204 = vmatpush.msrb.mxu1 %v5390_v58  ;;  %v5396_v58 = vld [vmem:[#allocation86_spill] sm:$0xff] }
 0x140   :  { %v1068_v56 = vmul.f32 0.5, %v1067_v27  ;;  %2290 = vmatpush.msrb.mxu2 %v5391_v4  ;;  %2339 = vmatpush.msrb.mxu3 %v4176_v24  ;;  %v5395_v27 = vld [vmem:[#allocation68_spill] sm:$0xff] }
 0x141   :  { %2157 = vmatpush.msrb.mxu0 %v4289_v13  ;;  %2210 = vmatpush.msrb.mxu1 %v5392_v46  ;;  %v5398_v46 = vld [vmem:[#allocation88_spill] sm:$0xff] }
 0x142   :  { %v1069_v23 = vsub.f32 1.5, %v1068_v56  ;;  %2293 = vmatpush.msrb.mxu2 %v5393_v33  ;;  %2341 = vmatpush.msrb.mxu3 %v4188_v49  ;;  %v5397_v56 = vld [vmem:[#allocation70_spill] sm:$0xff] }
 0x143   :  { %2159 = vmatpush.msrb.mxu0 %v4305_v34  ;;  %2216 = vmatpush.msrb.mxu1 %v5394_v8 }
 0x144   :  { %2296 = vmatpush.msrb.mxu2 %v5395_v27  ;;  %2343 = vmatpush.msrb.mxu3 %v4195_v14  ;;  %v1070_v4 = vmul.f32 %v3216_v10, %v1069_v23  ;;  %v5399_v27 = vld [vmem:[#allocation72_spill] sm:$0xff]  ;;  %v5401_v23 = vld [vmem:[#allocation91_spill] sm:$0xff] }
 0x145   :  { %2161 = vmatpush.msrb.mxu0 %v4324_v57  ;;  %2222 = vmatpush.msrb.mxu1 %v5396_v58 }
 0x146   :  { %2299 = vmatpush.msrb.mxu2 %v5397_v56  ;;  %2345 = vmatpush.msrb.mxu3 %v4207_v51  ;;  %v1074_v33 = vsel %vm1073_vm2, %v3216_v10, %v1070_v4  ;;  %v5402_v56 = vld [vmem:[#allocation74_spill] sm:$0xff]  ;;  %v5403_v4 = vld [vmem:[#allocation93_spill] sm:$0xff]  ;;  %v5404_v10 = vld [vmem:[#allocation76_spill] sm:$0xff] }
 0x147   :  { %2163 = vmatpush.msrb.mxu0 %v4342_v40  ;;  %2228 = vmatpush.msrb.mxu1 %v5398_v46  ;;  %v4707_v8 = vmul.f32 %v1074_v33, %v5399_v27  ;;  %v5405_v33 = vld [vmem:[#allocation79_spill] sm:$0xff]  ;;  %v2173_v27 = vsub.f32 %v1798_v6, %v4717_v5 }
 0x148   :  { %2302 = vmatpush.msrb.mxu2 %v4292_v32  ;;  %2347 = vmatpush.msrb.mxu3 %v4231_v25  ;;  %v5408_v6 = vld [vmem:[#allocation99_spill] sm:$0xff] }
 0x149   :  { %5400 = vst [vmem:[#allocation5_spill] sm:$0xff] %v4707_v8  ;;  %2165 = vmatpush.msrb.mxu0 %v4358_v60  ;;  %2234 = vmatpush.msrb.mxu1 %v5401_v23  ;;  %v5406_v8 = vld [vmem:[#allocation82_spill] sm:$0xff] }
 0x14a   :  { %2305 = vmatpush.msrb.mxu2 %v5402_v56  ;;  %2349 = vmatpush.msrb.mxu3 %v4248_v7 }
 0x14b   :  { %2167 = vmatpush.msrb.mxu0 %v4385_v29  ;;  %2240 = vmatpush.msrb.mxu1 %v5403_v4 }
 0x14c   :  { %2308 = vmatpush.msrb.mxu2 %v5404_v10  ;;  %2351 = vmatpush.msrb.mxu3 %v4268_v21 }
 0x14d   :  { %2169 = vmatpush.msrb.mxu0 %v4413_v44  ;;  %2246 = vmatpush.msrb.mxu1 %v4461_v17 }
 0x14e   :  { %2311 = vmatpush.msrb.mxu2 %v5405_v33  ;;  %2353 = vmatpush.msrb.mxu3 %v4289_v13  ;;  %v2174_v33 = vand.u32 4294901760, %v2173_v27 }
 0x14f   :  { %2171 = vmatpush.msrb.mxu0 %v4437_v0  ;;  %2252 = vmatpush.msrb.mxu1 %v4472_v35  ;;  %v5407_v35 = vld [vmem:[#allocation67_spill] sm:$0xff] }
 0x150   :  { %2314 = vmatpush.msrb.mxu2 %v5406_v8  ;;  %2355 = vmatpush.msrb.mxu3 %v4305_v34 }
 0x151   :  { %1991 = vmatmul.f32.vlgmr.msra.gmra.mxu0 %v4640_v20  ;;  %2258 = vmatpush.msrb.mxu1 %v4485_v9  ;;  %v5410_v9 = vand.u32 4294901760, %v4640_v20 }
 0x152   :  { %2378 = vmatpush.msra.mxu0 %v4210_v42  ;;  %2317 = vmatpush.msrb.mxu2 %v4381_v63  ;;  %v5409_v63 = vld [vmem:[#allocation90_spill] sm:$0xff]  ;;  %v2175_v42 = vsub.f32 %v2173_v27, %v2174_v33 }
 0x153   :  { %2357 = vmatpush.msrb.mxu3 %v4324_v57  ;;  %2099 = vmatmul.f32.vlgmr.msra.gmra.mxu2 %v4629_v62 }
 0x154   :  { %2382 = vmatpush.msra.mxu0 %v5407_v35  ;;  %2264 = vmatpush.msrb.mxu1 %v4499_v16 }
 0x155   :  { %2320 = vmatpush.msrb.mxu2 %v4400_v55  ;;  %2359 = vmatpush.msrb.mxu3 %v4342_v40 }
 0x156   :  { %2136 = vmatmul.f32.vlgmr.msra.gmra.mxu3 %v4629_v62  ;;  %2386 = vmatpush.msra.mxu0 %v4251_v61 }
 0x157   :  { %2270 = vmatpush.msrb.mxu1 %v5408_v6  ;;  %2323 = vmatpush.msrb.mxu2 %v5409_v63  ;;  %v1153_v62 = vpop.f32.mrf.mxu2  ;;  %v2176_v63 = vand.u32 4294901760, %v2175_v42  ;;  %v5411_v42 = vld [vmem:[#allocation11_spill] sm:$0xff] }
 0x158   :  { %2361 = vmatpush.msrb.mxu3 %v4358_v60  ;;  %2030 = vmatmul.f32.vlgmr.msra.gmra.mxu1 %v5410_v9  ;;  %v5414_v9 = vld [vmem:[#allocation10_spill] sm:$0xff] }
 0x159   :  { %2390 = vmatpush.msra.mxu0 %v4259_v45  ;;  %2276 = vmatpush.msrb.mxu1 %v4515_v43 }
 0x15a   :  { %2326 = vmatpush.msrb.mxu2 %v4451_v48  ;;  %2363 = vmatpush.msrb.mxu3 %v4385_v29  ;;  %v1254_v61 = vpop.f32.mrf.mxu3 }
 0x15b   :  { %2394 = vmatpush.msra.mxu0 %v4278_v39  ;;  %2445 = vmatpush.msra.mxu1 %v4160_v11  ;;  %v1255_v6 = vadd.f32 %v1254_v61, %v1153_v62  ;;  %v5413_v61 = vld [vmem:[#allocation84_spill] sm:$0xff]  ;;  %v5418_v62 = vld [vmem:[#allocation89_spill] sm:$0xff] }
 0x15c   :  { %2329 = vmatpush.msrb.mxu2 %v4466_v22  ;;  %2365 = vmatpush.msrb.mxu3 %v4413_v44 }
 0x15d   :  { %2332 = vmatmul.f32.vlgmr.msrb.gmra.mxu2 %v2173_v27  ;;  %2398 = vmatpush.msra.mxu0 %v4308_v2  ;;  %v5417_v27 = vld [vmem:[#allocation30_spill] sm:$0xff] }
 0x15e   :  { %2447 = vmatpush.msra.mxu1 %v4176_v24  ;;  %2484 = vmatpush.msra.mxu2 %v3782_v18 }
 0x15f   :  { %2367 = vmatpush.msrb.mxu3 %v4437_v0  ;;  %2177 = vmatmul.f32.vlgmr.msrb.gmra.mxu0 %v2176_v63  ;;  %v5412_v63 = vld [vmem:[#allocation25_spill] sm:$0xff] }
 0x160   :  { %2371 = vmatmul.f32.vlgmr.msrb.gmra.mxu3 %v2174_v33  ;;  %2402 = vmatpush.msra.mxu0 %v4327_v52  ;;  %v5416_v33 = vld [vmem:[#allocation87_spill] sm:$0xff] }
 0x161   :  { %2449 = vmatpush.msra.mxu1 %v4188_v49  ;;  %2486 = vmatpush.msra.mxu2 %v3791_v28 }
 0x162   :  { %2529 = vmatpush.msra.mxu3 %v5332_v30  ;;  %2278 = vmatmul.f32.vlgmr.msrb.gmra.mxu1 %v4717_v5  ;;  %v5415_v30 = vld [vmem:[#allocation27_spill] sm:$0xff] }
 0x163   :  { %2406 = vmatpush.msra.mxu0 %v4345_v26  ;;  %2451 = vmatpush.msra.mxu1 %v4195_v14  ;;  %v5427_v26 = vld [vmem:[#allocation50_spill] sm:$0xff] }
 0x164   :  { %2488 = vmatpush.msra.mxu2 %v3803_v38  ;;  %2535 = vmatpush.msra.mxu3 %v5333_v50 }
 0x165   :  { %2410 = vmatpush.msra.mxu0 %v4361_v54  ;;  %2453 = vmatpush.msra.mxu1 %v4207_v51  ;;  %v5426_v54 = vld [vmem:[#allocation98_spill] sm:$0xff] }
 0x166   :  { %2490 = vmatpush.msra.mxu2 %v5411_v42  ;;  %2541 = vmatpush.msra.mxu3 %v5412_v63  ;;  %v5419_v63 = vld [vmem:[#allocation34_spill] sm:$0xff] }
 0x167   :  { %2414 = vmatpush.msra.mxu0 %v5413_v61  ;;  %2455 = vmatpush.msra.mxu1 %v4231_v25  ;;  %v5420_v61 = vld [vmem:[#allocation92_spill] sm:$0xff] }
 0x168   :  { %2492 = vmatpush.msra.mxu2 %v5414_v9  ;;  %2547 = vmatpush.msra.mxu3 %v5415_v30  ;;  %v1308_v20 = vpop.f32.mrf.mxu0  ;;  %v5421_v30 = vld [vmem:[#allocation37_spill] sm:$0xff] }
 0x169   :  { %2418 = vmatpush.msra.mxu0 %v5416_v33  ;;  %2457 = vmatpush.msra.mxu1 %v4248_v7  ;;  %v1309_v50 = vadd.f32 %v1308_v20, %v1255_v6  ;;  %v5422_v6 = vld [vmem:[#allocation94_spill] sm:$0xff] }
 0x16a   :  { %2494 = vmatpush.msra.mxu2 %v3845_v31  ;;  %2553 = vmatpush.msra.mxu3 %v5417_v27  ;;  %v5423_v27 = vld [vmem:[#allocation40_spill] sm:$0xff] }
 0x16b   :  { %2422 = vmatpush.msra.mxu0 %v5418_v62  ;;  %2459 = vmatpush.msra.mxu1 %v4268_v21 }
 0x16c   :  { %2496 = vmatpush.msra.mxu2 %v3863_v59  ;;  %2559 = vmatpush.msra.mxu3 %v5419_v63  ;;  %v5424_v63 = vld [vmem:[#allocation96_spill] sm:$0xff] }
 0x16d   :  { %2426 = vmatpush.msra.mxu0 %v5420_v61  ;;  %2461 = vmatpush.msra.mxu1 %v4289_v13  ;;  %v5425_v61 = vld [vmem:[#allocation45_spill] sm:$0xff] }
 0x16e   :  { %2498 = vmatpush.msra.mxu2 %v3879_v12  ;;  %2565 = vmatpush.msra.mxu3 %v5421_v30 }
 0x16f   :  { %2430 = vmatpush.msra.mxu0 %v5422_v6  ;;  %2463 = vmatpush.msra.mxu1 %v4305_v34  ;;  %v1347_v20 = vpop.f32.mrf.mxu1 }
 0x170   :  { %2500 = vmatpush.msra.mxu2 %v3900_v3  ;;  %2571 = vmatpush.msra.mxu3 %v5423_v27  ;;  %v1348_v62 = vadd.f32 %v1347_v20, %v1309_v50  ;;  %v1416_v33 = vpop.f32.mrf.mxu2  ;;  %v5428_v20 = vld [vmem:[#allocation8_spill] sm:$0xff]  ;;  %v5430_v27 = vld [vmem:[#allocation9_spill] sm:$0xff] }
 0x171   :  { %2434 = vmatpush.msra.mxu0 %v5424_v63  ;;  %2465 = vmatpush.msra.mxu1 %v4324_v57  ;;  %v5433_v63 = vld [vmem:[#allocation57_spill] sm:$0xff] }
 0x172   :  { %2502 = vmatpush.msra.mxu2 %v3933_v19  ;;  %2577 = vmatpush.msra.mxu3 %v5425_v61  ;;  %v1417_v30 = vadd.f32 %v1416_v33, %v1348_v62  ;;  %v5429_v33 = vld [vmem:[#allocation53_spill] sm:$0xff] }
 0x173   :  { %2438 = vmatpush.msra.mxu0 %v5426_v54  ;;  %2467 = vmatpush.msra.mxu1 %v4342_v40  ;;  %v1453_v6 = vpop.f32.mrf.mxu3 }
 0x174   :  { %2504 = vmatpush.msra.mxu2 %v5339_v37  ;;  %2583 = vmatpush.msra.mxu3 %v5427_v26  ;;  %v1454_v50 = vadd.f32 %v1453_v6, %v1417_v30  ;;  %v5431_v26 = vld [vmem:[#allocation55_spill] sm:$0xff]  ;;  %v5432_v30 = vld [vmem:[#allocation14_spill] sm:$0xff] }
 0x175   :  { %2440 = vmatmul.f32.vlgmr.msra.gmra.mxu0 %v4717_v5  ;;  %2469 = vmatpush.msra.mxu1 %v4358_v60 }
 0x176   :  { %2627 = vmatpush.msrb.mxu0 %v5428_v20  ;;  %2506 = vmatpush.msra.mxu2 %v5342_v15  ;;  %v1494_v61 = vpop.f32.mrf.mxu0 }
 0x177   :  { %2589 = vmatpush.msra.mxu3 %v5429_v33  ;;  %2471 = vmatpush.msra.mxu1 %v4385_v29  ;;  %v1495_v62 = vadd.f32 %v1494_v61, %v1454_v50  ;;  %v5434_v50 = vld [vmem:[#allocation17_spill] sm:$0xff]  ;;  %v5435_v33 = vld [vmem:[#allocation58_spill] sm:$0xff] }
 0x178   :  { %2630 = vmatpush.msrb.mxu0 %v5430_v27  ;;  %2508 = vmatpush.msra.mxu2 %v5345_v53 }
 0x179   :  { %2595 = vmatpush.msra.mxu3 %v5431_v26  ;;  %2473 = vmatpush.msra.mxu1 %v4413_v44  ;;  %v1595_v6 = vpop.f32.mrf.mxu1  ;;  %v5436_v26 = vld [vmem:[#allocation19_spill] sm:$0xff] }
 0x17a   :  { %2633 = vmatpush.msrb.mxu0 %v5432_v30  ;;  %2510 = vmatpush.msra.mxu2 %v5348_v36  ;;  %v1596_v20 = vadd.f32 %v1595_v6, %v1495_v62  ;;  %v1649_v54 = vpop.f32.mrf.mxu2  ;;  %v5438_v6 = vld [vmem:[#allocation20_spill] sm:$0xff] }
 0x17b   :  { %2601 = vmatpush.msra.mxu3 %v5433_v63  ;;  %2475 = vmatpush.msra.mxu1 %v4437_v0  ;;  %v5437_v63 = vld [vmem:[#allocation59_spill] sm:$0xff]  ;;  %v5439_v30 = vld [vmem:[#allocation12_spill] sm:$0xff] }
 0x17c   :  { %2636 = vmatpush.msrb.mxu0 %v5434_v50  ;;  %2512 = vmatpush.msra.mxu2 %v5351_v47  ;;  %v1650_v61 = vadd.f32 %v1649_v54, %v1596_v20  ;;  %v5440_v54 = vld [vmem:[#allocation60_spill] sm:$0xff]  ;;  %v5441_v20 = vld [vmem:[#allocation22_spill] sm:$0xff] }
 0x17d   :  { %2607 = vmatpush.msra.mxu3 %v5435_v33  ;;  %2477 = vmatmul.f32.vlgmr.msra.gmra.mxu1 %v4717_v5  ;;  %v1688_v27 = vpop.f32.mrf.mxu3  ;;  %v5442_v5 = vld [vmem:[#allocation16_spill] sm:$0xff]  ;;  %v5445_v33 = vld [vmem:[#allocation7_spill] sm:$0xff] }
 0x17e   :  { %2639 = vmatpush.msrb.mxu0 %v5436_v26  ;;  %2680 = vmatpush.msrb.mxu1 %v3782_v18  ;;  %v1689_v62 = vadd.f32 %v1688_v27, %v1650_v61  ;;  %v5443_v50 = vld [vmem:[#allocation24_spill] sm:$0xff]  ;;  %v5444_v61 = vld [vmem:[#allocation18_spill] sm:$0xff]  ;;  %v5446_v27 = vld [vmem:[#allocation15_spill] sm:$0xff] }
 0x17f   :  { %2514 = vmatpush.msra.mxu2 %v5354_v41  ;;  %2613 = vmatpush.msra.mxu3 %v5437_v63  ;;  %v5447_v26 = vld [vmem:[#allocation31_spill] sm:$0xff] }
 0x180   :  { %2642 = vmatpush.msrb.mxu0 %v5438_v6  ;;  %2682 = vmatpush.msrb.mxu1 %v3791_v28  ;;  %v5448_v6 = vld [vmem:[#allocation21_spill] sm:$0xff] }
 0x181   :  { %2721 = vmatpush.msrb.mxu2 %v5439_v30  ;;  %2619 = vmatpush.msra.mxu3 %v5440_v54  ;;  %v5450_v30 = vld [vmem:[#allocation23_spill] sm:$0xff] }
 0x182   :  { %2645 = vmatpush.msrb.mxu0 %v5441_v20  ;;  %2684 = vmatpush.msrb.mxu1 %v3803_v38 }
 0x183   :  { %2725 = vmatpush.msrb.mxu2 %v5442_v5  ;;  %2788 = vmatpush.msrb.mxu3 %v3782_v18  ;;  %v3219_v18 = vld [vmem:[%s5012_s1 + $0x10] sm:$0xff] }
 0x184   :  { %2648 = vmatpush.msrb.mxu0 %v5443_v50  ;;  %2686 = vmatpush.msrb.mxu1 %v5411_v42  ;;  %v2481_v63 = vmul.f32 %v3219_v18, %v3219_v18  ;;  %v5452_v5 = vld [vmem:[#allocation26_spill] sm:$0xff] }
 0x185   :  { %2729 = vmatpush.msrb.mxu2 %v5444_v61  ;;  %2790 = vmatpush.msrb.mxu3 %v3791_v28  ;;  %v5449_v28 = vld [vmem:[#allocation35_spill] sm:$0xff]  ;;  %v5453_v50 = vld [vmem:[#allocation42_spill] sm:$0xff]  ;;  %v5454_v61 = vld [vmem:[#allocation28_spill] sm:$0xff] }
 0x186   :  { %2651 = vmatpush.msrb.mxu0 %v5445_v33  ;;  %2688 = vmatpush.msrb.mxu1 %v5414_v9  ;;  %v4851_v20 = vand.u32 4294901760, %v2481_v63 }
 0x187   :  { %2733 = vmatpush.msrb.mxu2 %v5446_v27  ;;  %2792 = vmatpush.msrb.mxu3 %v3803_v38  ;;  %v5451_v38 = vld [vmem:[#allocation39_spill] sm:$0xff]  ;;  %v5456_v27 = vld [vmem:[#allocation33_spill] sm:$0xff] }
 0x188   :  { %2654 = vmatpush.msrb.mxu0 %v5447_v26  ;;  %2690 = vmatpush.msrb.mxu1 %v3845_v31  ;;  %v4862_v33 = vsub.f32 %v2481_v63, %v4851_v20  ;;  %v5460_v63 = vld [vmem:[#allocation41_spill] sm:$0xff] }
 0x189   :  { %2737 = vmatpush.msrb.mxu2 %v5448_v6  ;;  %2794 = vmatpush.msrb.mxu3 %v5411_v42  ;;  %v5461_v6 = vld [vmem:[#allocation44_spill] sm:$0xff] }
 0x18a   :  { %2657 = vmatpush.msrb.mxu0 %v5449_v28  ;;  %2692 = vmatpush.msrb.mxu1 %v3863_v59  ;;  %v2517_v18 = vand.u32 4294901760, %v4862_v33  ;;  %v5462_v28 = vld [vmem:[#allocation48_spill] sm:$0xff] }
 0x18b   :  { %2741 = vmatpush.msrb.mxu2 %v5450_v30  ;;  %2796 = vmatpush.msrb.mxu3 %v5414_v9  ;;  %v5455_v9 = vld [vmem:[#allocation46_spill] sm:$0xff] }
 0x18c   :  { %2660 = vmatpush.msrb.mxu0 %v5451_v38  ;;  %2694 = vmatpush.msrb.mxu1 %v3879_v12  ;;  %v1757_v54 = vpop.f32.mrf.mxu0  ;;  %v5464_v30 = vld [vmem:[#allocation54_spill] sm:$0xff]  ;;  %v5466_v38 = vld [vmem:[#allocation56_spill] sm:$0xff] }
 0x18d   :  { %2745 = vmatpush.msrb.mxu2 %v5452_v5  ;;  %2798 = vmatpush.msrb.mxu3 %v3845_v31  ;;  %v1758_v42 = vadd.f32 %v1757_v54, %v1689_v62  ;;  %v5457_v31 = vld [vmem:[#allocation49_spill] sm:$0xff]  ;;  %v5458_v62 = vld [vmem:[#allocation38_spill] sm:$0xff] }
 0x18e   :  { %2663 = vmatpush.msrb.mxu0 %v5453_v50  ;;  %2696 = vmatpush.msrb.mxu1 %v3900_v3  ;;  %v5468_v54 = vld [vmem:[#allocation62_spill] sm:$0xff]  ;;  %v5471_v5 = vld [vmem:[#allocation65_spill] sm:$0xff]  ;;  %v5475_v50 = vld [vmem:[#allocation68_spill] sm:$0xff] }
 0x18f   :  { %2749 = vmatpush.msrb.mxu2 %v5454_v61  ;;  %2800 = vmatpush.msrb.mxu3 %v3863_v59  ;;  %v5459_v59 = vld [vmem:[#allocation52_spill] sm:$0xff]  ;;  %v5476_v61 = vld [vmem:[#allocation70_spill] sm:$0xff] }
 0x190   :  { %2666 = vmatpush.msrb.mxu0 %v5455_v9  ;;  %2698 = vmatpush.msrb.mxu1 %v3933_v19  ;;  %v3220_v9 = vld [vmem:[%s5012_s1 + $0x18] sm:$0xff]  ;;  %s3247_s1 = smov [#allocation2]  }
 0x191   :  { %2753 = vmatpush.msrb.mxu2 %v5456_v27  ;;  %2802 = vmatpush.msrb.mxu3 %v3879_v12  ;;  %v2482_v27 = vmul.f32 %v3220_v9, %v3220_v9  ;;  %s3198_s16 = sshll.u32 %s3247_s1, 4  ;;  %s3199_s16 = int_to_ptr.vmem [resolvable:$true] %s3198_s16 }
 0x192   :  { %2669 = vmatpush.msrb.mxu0 %v5457_v31  ;;  %2700 = vmatpush.msrb.mxu1 %v5339_v37  ;;  %v5483_v31 = vld [vmem:[#allocation99_spill] sm:$0xff] }
 0x193   :  { %2757 = vmatpush.msrb.mxu2 %v5458_v62  ;;  %2804 = vmatpush.msrb.mxu3 %v3900_v3  ;;  %v2518_v3 = vsub.f32 %v4862_v33, %v2517_v18  ;;  %v5484_v62 = vld [vmem:[#allocation90_spill] sm:$0xff] }
 0x194   :  { %2672 = vmatpush.msrb.mxu0 %v5459_v59  ;;  %2702 = vmatpush.msrb.mxu1 %v5342_v15  ;;  %v1794_v26 = vpop.f32.mrf.mxu1 }
 0x195   :  { %2761 = vmatpush.msrb.mxu2 %v5460_v63  ;;  %2806 = vmatpush.msrb.mxu3 %v3933_v19  ;;  %v4875_v12 = vadd.f32 %v1794_v26, %v1758_v42  ;;  %v5463_v19 = vld [vmem:[#allocation51_spill] sm:$0xff]  ;;  %v5473_v42 = vld [vmem:[#allocation66_spill] sm:$0xff] }
 0x196   :  { %2825 = vmatpush.msra.mxu0 %v4160_v11  ;;  %2704 = vmatpush.msrb.mxu1 %v5345_v53 }
 0x197   :  { %2765 = vmatpush.msrb.mxu2 %v5461_v6  ;;  %2808 = vmatpush.msrb.mxu3 %v5339_v37  ;;  %v2519_v37 = vand.u32 4294901760, %v2518_v3 }
 0x198   :  { %2827 = vmatpush.msra.mxu0 %v4176_v24  ;;  %2706 = vmatpush.msrb.mxu1 %v5348_v36 }
 0x199   :  { %2769 = vmatpush.msrb.mxu2 %v5462_v28  ;;  %2810 = vmatpush.msrb.mxu3 %v5342_v15  ;;  %v5465_v15 = vld [vmem:[#allocation71_spill] sm:$0xff] }
 0x19a   :  { %2829 = vmatpush.msra.mxu0 %v4188_v49  ;;  %2708 = vmatpush.msrb.mxu1 %v5351_v47 }
 0x19b   :  { %2773 = vmatpush.msrb.mxu2 %v5463_v19  ;;  %2812 = vmatpush.msrb.mxu3 %v5345_v53  ;;  %v5467_v53 = vld [vmem:[#allocation73_spill] sm:$0xff] }
 0x19c   :  { %2831 = vmatpush.msra.mxu0 %v4195_v14  ;;  %2710 = vmatpush.msrb.mxu1 %v5354_v41 }
 0x19d   :  { %2777 = vmatpush.msrb.mxu2 %v5464_v30  ;;  %2814 = vmatpush.msrb.mxu3 %v5348_v36  ;;  %v5469_v36 = vld [vmem:[#allocation75_spill] sm:$0xff] }
 0x19e   :  { %2833 = vmatpush.msra.mxu0 %v4207_v51  ;;  %2870 = vmatpush.msra.mxu1 %v5465_v15 }
 0x19f   :  { %2781 = vmatpush.msrb.mxu2 %v5466_v38  ;;  %2816 = vmatpush.msrb.mxu3 %v5351_v47  ;;  %v5470_v47 = vld [vmem:[#allocation77_spill] sm:$0xff] }
 0x1a0   :  { %2520 = vmatmul.f32.vlgmr.msra.gmra.mxu2 %v2519_v37  ;;  %2835 = vmatpush.msra.mxu0 %v4231_v25 }
 0x1a1   :  { %2876 = vmatpush.msra.mxu1 %v5467_v53  ;;  %2968 = vmatpush.msra.mxu2 %v5468_v54 }
 0x1a2   :  { %2818 = vmatpush.msrb.mxu3 %v5354_v41  ;;  %2837 = vmatpush.msra.mxu0 %v4248_v7  ;;  %v5472_v41 = vld [vmem:[#allocation80_spill] sm:$0xff] }
 0x1a3   :  { %2621 = vmatmul.f32.vlgmr.msra.gmra.mxu3 %v4851_v20  ;;  %2882 = vmatpush.msra.mxu1 %v5469_v36 }
 0x1a4   :  { %2971 = vmatpush.msra.mxu2 %v5389_v1  ;;  %3021 = vmatpush.msra.mxu3 %v4160_v11  ;;  %v5474_v1 = vld [vmem:[#allocation83_spill] sm:$0xff] }
 0x1a5   :  { %2839 = vmatpush.msra.mxu0 %v4268_v21  ;;  %2888 = vmatpush.msra.mxu1 %v5470_v47 }
 0x1a6   :  { %2974 = vmatpush.msra.mxu2 %v5471_v5  ;;  %3023 = vmatpush.msra.mxu3 %v4176_v24 }
 0x1a7   :  { %2841 = vmatpush.msra.mxu0 %v4289_v13  ;;  %2894 = vmatpush.msra.mxu1 %v5472_v41 }
 0x1a8   :  { %2977 = vmatpush.msra.mxu2 %v5473_v42  ;;  %3025 = vmatpush.msra.mxu3 %v4188_v49 }
 0x1a9   :  { %2843 = vmatpush.msra.mxu0 %v4305_v34  ;;  %2900 = vmatpush.msra.mxu1 %v5474_v1 }
 0x1aa   :  { %2980 = vmatpush.msra.mxu2 %v5475_v50  ;;  %3027 = vmatpush.msra.mxu3 %v4195_v14 }
 0x1ab   :  { %2845 = vmatpush.msra.mxu0 %v4324_v57  ;;  %2906 = vmatpush.msra.mxu1 %v5396_v58  ;;  %v5478_v58 = vld [vmem:[#allocation95_spill] sm:$0xff] }
 0x1ac   :  { %2983 = vmatpush.msra.mxu2 %v5476_v61  ;;  %3029 = vmatpush.msra.mxu3 %v4207_v51 }
 0x1ad   :  { %2847 = vmatpush.msra.mxu0 %v4342_v40  ;;  %2912 = vmatpush.msra.mxu1 %v5398_v46  ;;  %v4938_v46 = vand.u32 4294901760, %v2482_v27 }
 0x1ae   :  { %2986 = vmatpush.msra.mxu2 %v4292_v32  ;;  %3031 = vmatpush.msra.mxu3 %v4231_v25  ;;  %v5477_v32 = vld [vmem:[#allocation79_spill] sm:$0xff] }
 0x1af   :  { %2849 = vmatpush.msra.mxu0 %v4358_v60  ;;  %2918 = vmatpush.msra.mxu1 %v5401_v23  ;;  %v5479_v23 = vld [vmem:[#allocation97_spill] sm:$0xff] }
 0x1b0   :  { %2989 = vmatpush.msra.mxu2 %v5402_v56  ;;  %3033 = vmatpush.msra.mxu3 %v4248_v7  ;;  %v2857_v56 = vsub.f32 %v2482_v27, %v4938_v46 }
 0x1b1   :  { %2851 = vmatpush.msra.mxu0 %v4385_v29  ;;  %2924 = vmatpush.msra.mxu1 %v5403_v4  ;;  %v5480_v4 = vld [vmem:[#allocation64_spill] sm:$0xff] }
 0x1b2   :  { %2992 = vmatpush.msra.mxu2 %v5404_v10  ;;  %3035 = vmatpush.msra.mxu3 %v4268_v21  ;;  %v2858_v10 = vand.u32 4294901760, %v2857_v56 }
 0x1b3   :  { %2853 = vmatpush.msra.mxu0 %v4413_v44  ;;  %2930 = vmatpush.msra.mxu1 %v4461_v17  ;;  %v5481_v17 = vld [vmem:[#allocation85_spill] sm:$0xff] }
 0x1b4   :  { %2995 = vmatpush.msra.mxu2 %v5477_v32  ;;  %3037 = vmatpush.msra.mxu3 %v4289_v13  ;;  %v2859_v59 = vsub.f32 %v2857_v56, %v2858_v10 }
 0x1b5   :  { %2855 = vmatpush.msra.mxu0 %v4437_v0  ;;  %2936 = vmatpush.msra.mxu1 %v5478_v58 }
 0x1b6   :  { %2998 = vmatpush.msra.mxu2 %v5406_v8  ;;  %3039 = vmatpush.msra.mxu3 %v4305_v34  ;;  %v5482_v8 = vld [vmem:[#allocation69_spill] sm:$0xff] }
 0x1b7   :  { %2675 = vmatmul.f32.vlgmr.msrb.gmra.mxu0 %v4862_v33  ;;  %2942 = vmatpush.msra.mxu1 %v5479_v23 }
 0x1b8   :  { %3062 = vmatpush.msrb.mxu0 %v5480_v4  ;;  %3001 = vmatpush.msra.mxu2 %v5481_v17 }
 0x1b9   :  { %3041 = vmatpush.msra.mxu3 %v4324_v57  ;;  %2783 = vmatmul.f32.vlgmr.msrb.gmra.mxu2 %v4851_v20 }
 0x1ba   :  { %3066 = vmatpush.msrb.mxu0 %v5407_v35  ;;  %2948 = vmatpush.msra.mxu1 %v4499_v16 }
 0x1bb   :  { %3004 = vmatpush.msra.mxu2 %v4400_v55  ;;  %3043 = vmatpush.msra.mxu3 %v4342_v40  ;;  %v2860_v55 = vand.u32 4294901760, %v2859_v59 }
 0x1bc   :  { %2820 = vmatmul.f32.vlgmr.msrb.gmra.mxu3 %v4851_v20  ;;  %3070 = vmatpush.msrb.mxu0 %v5482_v8 }
 0x1bd   :  { %2954 = vmatpush.msra.mxu1 %v5483_v31  ;;  %3007 = vmatpush.msra.mxu2 %v5484_v62 }
 0x1be   :  { %3045 = vmatpush.msra.mxu3 %v4358_v60  ;;  %2714 = vmatmul.f32.vlgmr.msrb.gmra.mxu1 %v2517_v18 }
 0x1bf   :  { %3074 = vmatpush.msrb.mxu0 %v4259_v45  ;;  %2960 = vmatpush.msra.mxu1 %v4515_v43  ;;  %v5489_v45 = vld [vmem:[#allocation89_spill] sm:$0xff] }
 0x1c0   :  { %3010 = vmatpush.msra.mxu2 %v4451_v48  ;;  %3047 = vmatpush.msra.mxu3 %v4385_v29  ;;  %v5486_v48 = vld [vmem:[#allocation81_spill] sm:$0xff] }
 0x1c1   :  { %3078 = vmatpush.msrb.mxu0 %v4278_v39  ;;  %3129 = vmatpush.msrb.mxu1 %v4160_v11  ;;  %v5485_v39 = vld [vmem:[#allocation78_spill] sm:$0xff]  ;;  %v5487_v11 = vld [vmem:[#allocation84_spill] sm:$0xff] }
 0x1c2   :  { %3013 = vmatpush.msra.mxu2 %v4466_v22  ;;  %3049 = vmatpush.msra.mxu3 %v4413_v44 }
 0x1c3   :  { %3016 = vmatmul.f32.vlgmr.msra.gmra.mxu2 %v2857_v56  ;;  %3082 = vmatpush.msrb.mxu0 %v4308_v2 }
 0x1c4   :  { %3131 = vmatpush.msrb.mxu1 %v4176_v24  ;;  %3051 = vmatpush.msra.mxu3 %v4437_v0  ;;  %v5488_v24 = vld [vmem:[#allocation87_spill] sm:$0xff] }
 0x1c5   :  { %2861 = vmatmul.f32.vlgmr.msra.gmra.mxu0 %v2860_v55  ;;  %3055 = vmatmul.f32.vlgmr.msra.gmra.mxu3 %v2858_v10 }
 0x1c6   :  { %3086 = vmatpush.msrb.mxu0 %v4327_v52  ;;  %3133 = vmatpush.msrb.mxu1 %v4188_v49  ;;  %v5490_v49 = vld [vmem:[#allocation92_spill] sm:$0xff] }
 0x1c7   :  { %2962 = vmatmul.f32.vlgmr.msra.gmra.mxu1 %v4938_v46 }
 0x1c8   :  { %3090 = vmatpush.msrb.mxu0 %v5485_v39  ;;  %3135 = vmatpush.msrb.mxu1 %v4195_v14  ;;  %v5491_v14 = vld [vmem:[#allocation94_spill] sm:$0xff] }
 0x1ca   :  { %3094 = vmatpush.msrb.mxu0 %v5486_v48  ;;  %3137 = vmatpush.msrb.mxu1 %v4207_v51  ;;  %v5492_v51 = vld [vmem:[#allocation96_spill] sm:$0xff] }
 0x1cc   :  { %3098 = vmatpush.msrb.mxu0 %v5487_v11  ;;  %3139 = vmatpush.msrb.mxu1 %v4231_v25  ;;  %v5493_v25 = vld [vmem:[#allocation98_spill] sm:$0xff]  ;;  %v5494_v11 = vld [vmem:[#allocation5_spill] sm:$0xff] }
 0x1ce   :  { %3102 = vmatpush.msrb.mxu0 %v5488_v24  ;;  %3141 = vmatpush.msrb.mxu1 %v4248_v7  ;;  %v1837_v7 = vpop.f32.mrf.mxu2 }
 0x1d0   :  { %3106 = vmatpush.msrb.mxu0 %v5489_v45  ;;  %3143 = vmatpush.msrb.mxu1 %v4268_v21  ;;  %v1938_v21 = vpop.f32.mrf.mxu3 }
 0x1d1   :  { %v1939_v20 = vadd.f32 %v1938_v21, %v1837_v7 }
 0x1d2   :  { %3110 = vmatpush.msrb.mxu0 %v5490_v49  ;;  %3145 = vmatpush.msrb.mxu1 %v4289_v13  ;;  %v1992_v13 = vpop.f32.mrf.mxu0 }
 0x1d4   :  { %3114 = vmatpush.msrb.mxu0 %v5491_v14  ;;  %3147 = vmatpush.msrb.mxu1 %v4305_v34 }
 0x1d6   :  { %3118 = vmatpush.msrb.mxu0 %v5492_v51  ;;  %3149 = vmatpush.msrb.mxu1 %v4324_v57  ;;  %v2031_v57 = vpop.f32.mrf.mxu1  ;;  %v2100_v2 = vpop.f32.mrf.mxu2 }
 0x1d8   :  { %3122 = vmatpush.msrb.mxu0 %v5493_v25  ;;  %3151 = vmatpush.msrb.mxu1 %v4342_v40 }
 0x1d9   :  { %3124 = vmatmul.f32.vlgmr.msrb.gmra.mxu0 %v4938_v46  ;;  %v2137_v34 = vpop.f32.mrf.mxu3 }
 0x1da   :  { %3153 = vmatpush.msrb.mxu1 %v4358_v60 }
 0x1dc   :  { %3155 = vmatpush.msrb.mxu1 %v4385_v29  ;;  %v2178_v52 = vpop.f32.mrf.mxu0 }
 0x1de   :  { %3157 = vmatpush.msrb.mxu1 %v4413_v44 }
 0x1df   :  { %v2279_v40 = vpop.f32.mrf.mxu1 }
 0x1e0   :  { %3159 = vmatpush.msrb.mxu1 %v4437_v0  ;;  %v2333_v35 = vpop.f32.mrf.mxu2  ;;  %v1993_v0 = vadd.f32 %v1992_v13, %v1939_v20 }
 0x1e1   :  { %3161 = vmatmul.f32.vlgmr.msrb.gmra.mxu1 %v4938_v46 }
 0x1e2   :  { %v2032_v63 = vadd.f32 %v2031_v57, %v1993_v0 }
 0x1e3   :  { %v2372_v22 = vpop.f32.mrf.mxu3 }
 0x1e4   :  { %v2101_v28 = vadd.f32 %v2100_v2, %v2032_v63 }
 0x1e6   :  { %v2138_v30 = vadd.f32 %v2137_v34, %v2101_v28 }
 0x1e8   :  { %v2179_v53 = vadd.f32 %v2178_v52, %v2138_v30 }
 0x1ea   :  { %v2280_v47 = vadd.f32 %v2279_v40, %v2179_v53 }
 0x1ec   :  { %v2334_v42 = vadd.f32 %v2333_v35, %v2280_v47 }
 0x1ee   :  { %v2373_v9 = vadd.f32 %v2372_v22, %v2334_v42 }
 0x1f2   :  { %v2441_v16 = vpop.f32.mrf.mxu0 }
 0x1f3   :  { %v2442_v46 = vadd.f32 %v2441_v16, %v2373_v9 }
 0x1fa   :  { %v2478_v60 = vpop.f32.mrf.mxu1 }
 0x1fb   :  { %v2479_v56 = vadd.f32 %v2478_v60, %v2442_v46 }
 0x223   :  { %v2521_v29 = vpop.f32.mrf.mxu2 }
 0x226   :  { %v2622_v43 = vpop.f32.mrf.mxu3 }
 0x227   :  { %v2623_v44 = vadd.f32 %v2622_v43, %v2521_v29 }
 0x234   :  { %v2676_v33 = vpop.f32.mrf.mxu0 }
 0x235   :  { %v2677_v26 = vadd.f32 %v2676_v33, %v2623_v44 }
 0x23b   :  { %v2715_v18 = vpop.f32.mrf.mxu1 }
 0x23c   :  { %v2716_v6 = vadd.f32 %v2715_v18, %v2677_v26  ;;  %v2784_v3 = vpop.f32.mrf.mxu2 }
 0x23e   :  { %v2785_v19 = vadd.f32 %v2784_v3, %v2716_v6 }
 0x23f   :  { %v2821_v37 = vpop.f32.mrf.mxu3 }
 0x240   :  { %v2822_v15 = vadd.f32 %v2821_v37, %v2785_v19 }
 0x242   :  { %v2862_v38 = vpop.f32.mrf.mxu0 }
 0x243   :  { %v2863_v54 = vadd.f32 %v2862_v38, %v2822_v15 }
 0x244   :  { %v2963_v36 = vpop.f32.mrf.mxu1 }
 0x245   :  { %v2964_v5 = vadd.f32 %v2963_v36, %v2863_v54 }
 0x246   :  { %v3017_v41 = vpop.f32.mrf.mxu2 }
 0x247   :  { %v3018_v1 = vadd.f32 %v3017_v41, %v2964_v5 }
 0x248   :  { %v3056_v50 = vpop.f32.mrf.mxu3 }
 0x249   :  { %v3057_v27 = vadd.f32 %v3056_v50, %v3018_v1 }
 0x256   :  { %v3125_v61 = vpop.f32.mrf.mxu0 }
 0x257   :  { %v3126_v32 = vadd.f32 %v3125_v61, %v3057_v27 }
 0x25e   :  { %v3162_v58 = vpop.f32.mrf.mxu1 }
 0x25f   :  { %v3163_v23 = vadd.f32 %v3162_v58, %v3126_v32 }
 0x261   :  { %v3165_v4 = vmul.f32 %v3163_v23, %v2479_v56 }
 0x263   :  { %v3166_v17 = vmax.f32 %v3165_v4, 1e-16 }
 0x265   :  { %3217 = vrsqrt.f32 %v3166_v17  ;;  %vm3173_vm4 = vweird.f32 %v3166_v17 }
 0x26b   :  { %v3218_v10 = vpop.eup %3217 }
 0x26c   :  { %v3168_v8 = vmul.f32 %v3218_v10, %v3166_v17  ;;  %vm3174_vm3 = vweird.f32 %v3218_v10 }
 0x26d   :  { %vm3175_vm5 = vmor %vm3173_vm4, %vm3174_vm3 }
 0x26e   :  { %v3169_v31 = vmul.f32 %v3218_v10, %v3168_v8 }
 0x270   :  { %v3170_v62 = vmul.f32 0.5, %v3169_v31 }
 0x272   :  { %v3171_v59 = vsub.f32 1.5, %v3170_v62 }
 0x274   :  { %v3172_v55 = vmul.f32 %v3218_v10, %v3171_v59 }
 0x276   :  { %v3176_v39 = vsel %vm3175_vm5, %v3218_v10, %v3172_v55 }
 0x277   :  { %v3177_v48 = vmul.f32 %v3176_v39, %v4875_v12 }
 0x279   :  { %v3178_v24 = vsub.f32 %v5494_v11, %v3177_v48 }
 0x27b   :  { %v3179_v45 = vmul.f32 %v3178_v24, %v3178_v24 }
 0x27d   :  { %v3181_v49 = vsel %vm3180_vm6, %v3179_v45, 0.0 }
 0x27e   :  { %3182 = vadd.xlane.f32.xlu0 %v3181_v49 }
 0x2f1   :  { %v3183_v14 = vpop.xlane.xlu0 %3182 }
 0x2f2   :  { %v3184_v51 = vrot.slane %v3183_v14, 4 }
 0x2f4   :  { %v3185_v25 = vadd.f32 %v3184_v51, %v3183_v14 }
 0x2f6   :  { %v3186_v21 = vrot.slane %v3185_v25, 2 }
 0x2f8   :  { %v3187_v7 = vadd.f32 %v3186_v21, %v3185_v25 }
 0x2fa   :  { %v3188_v13 = vrot.slane %v3187_v7, 1 }
 0x2fc   :  { %v3189_v57 = vadd.f32 %v3188_v13, %v3187_v7 }
 0x2fe   :  { %3212 = vpush %v3189_v57 }
 0x32f   :  { %s3213_s20 = spop %3212 }
 0x330   :  { %v3191_v12 = vstv %s3213_s20 }
 0x331   :  { %3192 = vst [vmem:[#allocation2] sm:$0xff] %v3191_v12 }
 0x332   :  { %3203 = dma.vmem_to_hbm [thread:$0]  %s3199_s16, 128, %s3201_s19, [#allocation3]  }
 0x333   :  { %3245 = dma.done.wait [#allocation3], 128  }
 0x334   :  { %3246 = vsyncadd [#allocation3], 4294967168 }
 0x335   :  { %3208 = vsyncpa [#allocation3], 1 }

</bundles_post_ra>
